<compile_context>
chip_gen: v6e
topology: v6e:2x2x1
jax: 0.10.0
libtpu: 0.0.40
codegen_flags: <defaults>
</compile_context>

<pallas_src>
import jax
import jax.numpy as jnp
from jax.experimental import pallas as pl
from jax.experimental.pallas import tpu as pltpu

NUM_ID_WEIGHTS = 7            # module owns 7 per-label weight matrices (labels 1..7)
LANE = 128
SUBLANE = 8
STACKED_INTERMEDIATE_CAP = 4 << 20   # max f32 (TN, 7*Dp) intermediate for stacked matmul
OX_RESIDENT_CAP = 4 << 20            # keep ox fully VMEM-resident below this size


def _round_up(x, m):
    return ((x + m - 1) // m) * m


def _pick_tile(n, max_tile, mult):
    """Largest tile <= max_tile, multiple of `mult`, that pads n tightly."""
    n_up = _round_up(max(n, 1), mult)
    if n_up <= max_tile:
        return n_up
    n_tiles = -(-n_up // max_tile)
    return _round_up(-(-n_up // n_tiles), mult)


def _compiler_params(semantics, est_vmem_bytes):
    limit = None
    if est_vmem_bytes > (12 << 20):      # beyond conservative default scoped window (v5e)
        limit = int(min(est_vmem_bytes + (8 << 20), 64 << 20))
    return pltpu.CompilerParams(dimension_semantics=semantics,
                                vmem_limit_bytes=limit)


# ---------------------------------------------------------------------------
# Kernel 1: per-node ID / label transform
#   one large node tile per grid step; bf16 MXU operands, f32 accumulation;
#   flags block = [id-mask | label one-hot] packed into 8 columns.
# ---------------------------------------------------------------------------
def _make_id_transform_kernel(d_pad, stacked):
    def kernel(x_ref, flags_ref, w_ref, wid_ref, ox_ref):
        cd = w_ref.dtype                                     # streaming/compute dtype (bf16)
        x = x_ref[...]                                       # (TN, Dp) f32
        flags = flags_ref[...]                               # (TN, 8)  f32
        xw = jnp.dot(x.astype(cd), w_ref[...],
                     preferred_element_type=jnp.float32)
        xp = x + flags[:, 0:1] * xw                          # x.index_add_(id, x[id] @ W)
        xp_c = xp.astype(cd)
        acc = xp                                             # ox = xp.clone()
        if stacked:
            # One MXU pass over all 7 label weights; 128-aligned column slices.
            y = jnp.dot(xp_c, wid_ref[...], preferred_element_type=jnp.float32)
            for i in range(NUM_ID_WEIGHTS):
                acc = acc + flags[:, i + 1:i + 2] * y[:, i * d_pad:(i + 1) * d_pad]
        else:
            # Per-weight loop bounds the (TN, 7*Dp) intermediate (VMEM budget, v7x).
            for i in range(NUM_ID_WEIGHTS):
                yi = jnp.dot(xp_c, wid_ref[:, i * d_pad:(i + 1) * d_pad],
                             preferred_element_type=jnp.float32)
                acc = acc + flags[:, i + 1:i + 2] * yi
        ox_ref[...] = acc.astype(ox_ref.dtype)
    return kernel


def id_transform(x_pad, flags, w_pad, wid_pad, *, tile_n, out_dtype):
    n_pad, d_pad = x_pad.shape
    stacked = tile_n * NUM_ID_WEIGHTS * d_pad * 4 <= STACKED_INTERMEDIATE_CAP
    est = (2 * tile_n * d_pad * x_pad.dtype.itemsize           # x (double-buffered)
           + 2 * tile_n * LANE * flags.dtype.itemsize          # flags (lane-padded)
           + 2 * d_pad * d_pad * w_pad.dtype.itemsize          # W
           + 2 * d_pad * NUM_ID_WEIGHTS * d_pad * wid_pad.dtype.itemsize   # W_id
           + 2 * tile_n * d_pad * jnp.dtype(out_dtype).itemsize            # ox out
           + (NUM_ID_WEIGHTS if stacked else 1) * tile_n * d_pad * 4       # matmul temp
           + 3 * tile_n * d_pad * 4)                                       # xp/acc temps
    return pl.pallas_call(
        _make_id_transform_kernel(d_pad, stacked),
        out_shape=jax.ShapeDtypeStruct((n_pad, d_pad), out_dtype),
        grid_spec=pltpu.PrefetchScalarGridSpec(
            num_scalar_prefetch=0,
            grid=(n_pad // tile_n,),
            in_specs=[
                pl.BlockSpec((tile_n, d_pad), lambda i: (i, 0)),                   # x
                pl.BlockSpec((tile_n, 1 + NUM_ID_WEIGHTS), lambda i: (i, 0)),      # flags
                pl.BlockSpec((d_pad, d_pad), lambda i: (0, 0)),                    # W
                pl.BlockSpec((d_pad, NUM_ID_WEIGHTS * d_pad), lambda i: (0, 0)),   # W_id
            ],
            out_specs=pl.BlockSpec((tile_n, d_pad), lambda i: (i, 0)),
        ),
        compiler_params=_compiler_params(("parallel",), est),
    )(x_pad, flags, w_pad, wid_pad)


# ---------------------------------------------------------------------------
# Kernel 2: message passing as tiled normalized-adjacency matmul
#   out[i] = sum_{e: j->i} norm_e * ox[j]  ==  A_norm @ ox
#   grid = (row tiles [parallel], k tiles [arbitrary/reduction]); the f32
#   output block is resident across k and serves directly as the accumulator.
# ---------------------------------------------------------------------------
def _aggregate_kernel(a_ref, ox_ref, o_ref):
    @pl.when(pl.program_id(1) == 0)
    def _():
        o_ref[...] = jnp.zeros_like(o_ref)

    o_ref[...] += jnp.dot(a_ref[...], ox_ref[...],
                          preferred_element_type=jnp.float32)


def aggregate(a_pad, ox_pad, *, tm, tk):
    npm, npk = a_pad.shape
    d_pad = ox_pad.shape[1]
    ox_resident = npk * d_pad * ox_pad.dtype.itemsize <= OX_RESIDENT_CAP
    if ox_resident:
        # Whole ox stays in VMEM; constant block index => fetched once, reused.
        ox_spec = pl.BlockSpec((npk, d_pad), lambda i, k: (0, 0))
        ox_bytes = 2 * npk * d_pad * ox_pad.dtype.itemsize
    else:
        ox_spec = pl.BlockSpec((tk, d_pad), lambda i, k: (k, 0))
        ox_bytes = 2 * tk * d_pad * ox_pad.dtype.itemsize
    est = (2 * tm * tk * a_pad.dtype.itemsize      # A stream (double-buffered bf16)
           + ox_bytes
           + 2 * tm * d_pad * 4)                   # f32 output block
    return pl.pallas_call(
        _aggregate_kernel,
        out_shape=jax.ShapeDtypeStruct((npm, d_pad), jnp.float32),
        grid_spec=pltpu.PrefetchScalarGridSpec(
            num_scalar_prefetch=0,
            grid=(npm // tm, npk // tk),
            in_specs=[
                pl.BlockSpec((tm, tk), lambda i, k: (i, k)),   # A_norm tile
                ox_spec,                                       # ox
            ],
            out_specs=pl.BlockSpec((tm, d_pad), lambda i, k: (i, 0)),
        ),
        compiler_params=_compiler_params(("parallel", "arbitrary"), est),
    )(a_pad, ox_pad)


# ---------------------------------------------------------------------------
# Plain-JAX glue: GCN normalization (GeneralIDConvLayer.norm) and forward
# ---------------------------------------------------------------------------
def gcn_norm(edge_index, num_nodes, improved=False, dtype=jnp.float32):
    # Faithful to .norm() for self-loop-free input edge_index:
    # append self-loops with fill_value, symmetric D^-1/2 A D^-1/2 weights.
    row, col = edge_index[0], edge_index[1]
    ew = jnp.ones((edge_index.shape[1],), dtype)
    fill = 2.0 if improved else 1.0
    loop = jnp.arange(num_nodes, dtype=edge_index.dtype)
    row = jnp.concatenate([row, loop])
    col = jnp.concatenate([col, loop])
    ew = jnp.concatenate([ew, jnp.full((num_nodes,), fill, dtype)])
    deg = jnp.zeros((num_nodes,), dtype).at[row].add(ew)
    dinv = jnp.where(deg > 0, jax.lax.rsqrt(deg), 0.0)
    norm = dinv[row] * ew * dinv[col]
    return row, col, norm


def general_id_conv_forward(x, edge_index, node_id_index, node_label, params,
                            *, max_tile_m=2048, max_tile_k=2048,
                            stream_dtype=jnp.bfloat16):
    n, d = x.shape
    d_pad = _round_up(d, LANE)                   # lane-dense feature dim end-to-end
    tm = _pick_tile(n, max_tile_m, SUBLANE)      # output-row tile (sublane multiple)
    tk = _pick_tile(n, max_tile_k, LANE)         # reduction/source tile (lane multiple)
    npm = _round_up(n, tm)
    npk = _round_up(n, tk)

    # --- Kernel-1 operands, padded once (zero pad rows/cols are exact zeros) ---
    x_pad = jnp.pad(x, ((0, npk - n), (0, d_pad - d)))
    flags = jnp.zeros((npk, 1 + NUM_ID_WEIGHTS), x.dtype)
    flags = flags.at[node_id_index, 0].set(1.0)                         # ego-id mask
    flags = flags.at[:n, 1:].set(
        (node_label[:, None] == jnp.arange(1, NUM_ID_WEIGHTS + 1)[None, :]
         ).astype(x.dtype))                                             # label one-hot
    w_pad = jnp.pad(params["weight"].astype(stream_dtype),
                    ((0, d_pad - d), (0, d_pad - d)))
    # W_id stacked along output columns at lane-aligned offsets: [:, i*Dp : i*Dp+d]
    wid_pad = jnp.concatenate(
        [jnp.pad(params["weight_id"][i].astype(stream_dtype),
                 ((0, d_pad - d), (0, d_pad - d)))
         for i in range(NUM_ID_WEIGHTS)], axis=1)

    # ox emitted already in the streaming dtype at the aggregate's k-padded rows.
    ox = id_transform(x_pad, flags, w_pad, wid_pad,
                      tile_n=tk, out_dtype=stream_dtype)                # (npk, Dp)

    # --- GCN normalization + dense normalized adjacency built directly at the
    #     padded (npm, npk) shape in the streaming dtype (single HBM pass). Each
    #     cell is a single scatter value (plus exact-zero padding), so the cast
    #     is pure quantization. out[target] += norm_e * ox[source].
    row, col, norm = gcn_norm(edge_index, n, dtype=jnp.float32)
    a_norm = jnp.zeros((npm, npk), stream_dtype).at[col, row].add(
        norm.astype(stream_dtype))

    out = aggregate(a_norm, ox, tm=tm, tk=tk)
    return out[:n, :d]           # bias=False in GeneralIDConv.__init__, so no bias add


# Pure-JAX f32 reference for correctness checking
def reference(x, edge_index, node_id_index, node_label, params):
    hi = jax.lax.Precision.HIGHEST
    xp = x.at[node_id_index].add(
        jnp.dot(x[node_id_index], params["weight"], precision=hi))
    ox = xp
    for i in range(NUM_ID_WEIGHTS):
        mask = (node_label == i + 1).astype(x.dtype)[:, None]
        ox = ox + mask * jnp.dot(xp, params["weight_id"][i], precision=hi)
    row, col, norm = gcn_norm(edge_index, x.shape[0], dtype=x.dtype)
    return jnp.zeros_like(ox).at[col].add(norm[:, None] * ox[row])


if __name__ == "__main__":
    N, D, E = 16, 32, 48
    key = jax.random.PRNGKey(0)
    k1, k2, k3, k4, k5, k6 = jax.random.split(key, 6)

    x = jax.random.normal(k1, (N, D), jnp.float32)
    src = jax.random.randint(k2, (E,), 0, N)
    dst = jax.random.randint(k3, (E,), 0, N)
    dst = jnp.where(src == dst, (dst + 1) % N, dst)      # keep input self-loop-free
    edge_index = jnp.stack([src, dst]).astype(jnp.int32)
    node_id_index = jnp.array([0, 3, 7, 12], jnp.int32)  # ego-graph center nodes
    node_label = jax.random.randint(k4, (N,), 0, NUM_ID_WEIGHTS + 1).astype(jnp.int32)

    # glorot: U(-a, a), a = sqrt(6 / (fan_in + fan_out)); bias would be zeros.
    a = (6.0 / (D + D)) ** 0.5
    params = {
        "weight": jax.random.uniform(k5, (D, D), jnp.float32, -a, a),
        "weight_id": jax.random.uniform(k6, (NUM_ID_WEIGHTS, D, D), jnp.float32, -a, a),
    }

    out = general_id_conv_forward(x, edge_index, node_id_index, node_label, params)
    out = jax.block_until_ready(out)

    ref = reference(x, edge_index, node_id_index, node_label, params)
    assert out.shape == (N, D) and out.dtype == jnp.float32
    # bf16 streaming of A / ox / weights (f32 accumulation) => ~1e-2-scale error.
    assert jnp.allclose(out, ref, atol=3e-2, rtol=3e-2), "mismatch vs reference"
    print("KERNEL_OK")
</pallas_src>

<mosaic_0001>
module attributes {stable_mosaic.version = 11 : i64} {
  func.func @kernel(%arg0: i32, %arg1: memref<128x128xf32, #tpu.memory_space<vmem>>, %arg2: memref<128x8xf32, #tpu.memory_space<vmem>>, %arg3: memref<128x128xbf16, #tpu.memory_space<vmem>>, %arg4: memref<128x896xbf16, #tpu.memory_space<vmem>>, %arg5: memref<128x128xbf16, #tpu.memory_space<vmem>>) attributes {dimension_semantics = [#tpu.dimension_semantics<parallel>], iteration_bounds = array<i64: 1>, scalar_prefetch = 0 : i64, scratch_operands = 0 : i64, tpu.core_type = #tpu.core_type<tc>, window_params = [{transform_indices = @transform_0, window_bounds = array<i64: 128, 128>}, {transform_indices = @transform_1, window_bounds = array<i64: 128, 8>}, {pipeline_mode = #tpu.pipeline_mode<synchronous>, transform_indices = @transform_2, window_bounds = array<i64: 128, 128>}, {pipeline_mode = #tpu.pipeline_mode<synchronous>, transform_indices = @transform_3, window_bounds = array<i64: 128, 896>}, {transform_indices = @transform_4, window_bounds = array<i64: 128, 128>}]} {
    %c0 = arith.constant 0 : index
    %c0_0 = arith.constant 0 : index
    %0 = vector.load %arg1[%c0, %c0_0] : memref<128x128xf32, #tpu.memory_space<vmem>>, vector<128x128xf32>
    %c0_1 = arith.constant 0 : index
    %c0_2 = arith.constant 0 : index
    %1 = vector.load %arg2[%c0_1, %c0_2] : memref<128x8xf32, #tpu.memory_space<vmem>>, vector<128x8xf32>
    %2 = arith.truncf %0 : vector<128x128xf32> to vector<128x128xbf16>
    %c0_3 = arith.constant 0 : index
    %c0_4 = arith.constant 0 : index
    %3 = vector.load %arg3[%c0_3, %c0_4] : memref<128x128xbf16, #tpu.memory_space<vmem>>, vector<128x128xbf16>
    %cst = arith.constant dense<0.000000e+00> : vector<128x128xf32>
    %4 = tpu.matmul %2, %3, %cst {dimension_numbers = #tpu.dot_dimension_numbers<[1], [0], [0], [1], [0, 0, 1, 1], [], []>} : vector<128x128xbf16>, vector<128x128xbf16>, vector<128x128xf32> -> vector<128x128xf32>
    %5 = vector.extract_strided_slice %1 {offsets = [0, 0], sizes = [128, 1], strides = [1, 1]} : vector<128x8xf32> to vector<128x1xf32>
    %6 = vector.broadcast %5 : vector<128x1xf32> to vector<128x128xf32>
    %7 = arith.mulf %6, %4 : vector<128x128xf32>
    %8 = arith.addf %0, %7 : vector<128x128xf32>
    %9 = arith.truncf %8 : vector<128x128xf32> to vector<128x128xbf16>
    %c0_5 = arith.constant 0 : index
    %c0_6 = arith.constant 0 : index
    %10 = vector.load %arg4[%c0_5, %c0_6] : memref<128x896xbf16, #tpu.memory_space<vmem>>, vector<128x896xbf16>
    %cst_7 = arith.constant dense<0.000000e+00> : vector<128x896xf32>
    %11 = tpu.matmul %9, %10, %cst_7 {dimension_numbers = #tpu.dot_dimension_numbers<[1], [0], [0], [1], [0, 0, 1, 1], [], []>} : vector<128x128xbf16>, vector<128x896xbf16>, vector<128x896xf32> -> vector<128x896xf32>
    %12 = vector.extract_strided_slice %1 {offsets = [0, 1], sizes = [128, 1], strides = [1, 1]} : vector<128x8xf32> to vector<128x1xf32>
    %13 = vector.extract_strided_slice %11 {offsets = [0, 0], sizes = [128, 128], strides = [1, 1]} : vector<128x896xf32> to vector<128x128xf32>
    %14 = vector.broadcast %12 : vector<128x1xf32> to vector<128x128xf32>
    %15 = arith.mulf %14, %13 : vector<128x128xf32>
    %16 = arith.addf %8, %15 : vector<128x128xf32>
    %17 = vector.extract_strided_slice %1 {offsets = [0, 2], sizes = [128, 1], strides = [1, 1]} : vector<128x8xf32> to vector<128x1xf32>
    %18 = vector.extract_strided_slice %11 {offsets = [0, 128], sizes = [128, 128], strides = [1, 1]} : vector<128x896xf32> to vector<128x128xf32>
    %19 = vector.broadcast %17 : vector<128x1xf32> to vector<128x128xf32>
    %20 = arith.mulf %19, %18 : vector<128x128xf32>
    %21 = arith.addf %16, %20 : vector<128x128xf32>
    %22 = vector.extract_strided_slice %1 {offsets = [0, 3], sizes = [128, 1], strides = [1, 1]} : vector<128x8xf32> to vector<128x1xf32>
    %23 = vector.extract_strided_slice %11 {offsets = [0, 256], sizes = [128, 128], strides = [1, 1]} : vector<128x896xf32> to vector<128x128xf32>
    %24 = vector.broadcast %22 : vector<128x1xf32> to vector<128x128xf32>
    %25 = arith.mulf %24, %23 : vector<128x128xf32>
    %26 = arith.addf %21, %25 : vector<128x128xf32>
    %27 = vector.extract_strided_slice %1 {offsets = [0, 4], sizes = [128, 1], strides = [1, 1]} : vector<128x8xf32> to vector<128x1xf32>
    %28 = vector.extract_strided_slice %11 {offsets = [0, 384], sizes = [128, 128], strides = [1, 1]} : vector<128x896xf32> to vector<128x128xf32>
    %29 = vector.broadcast %27 : vector<128x1xf32> to vector<128x128xf32>
    %30 = arith.mulf %29, %28 : vector<128x128xf32>
    %31 = arith.addf %26, %30 : vector<128x128xf32>
    %32 = vector.extract_strided_slice %1 {offsets = [0, 5], sizes = [128, 1], strides = [1, 1]} : vector<128x8xf32> to vector<128x1xf32>
    %33 = vector.extract_strided_slice %11 {offsets = [0, 512], sizes = [128, 128], strides = [1, 1]} : vector<128x896xf32> to vector<128x128xf32>
    %34 = vector.broadcast %32 : vector<128x1xf32> to vector<128x128xf32>
    %35 = arith.mulf %34, %33 : vector<128x128xf32>
    %36 = arith.addf %31, %35 : vector<128x128xf32>
    %37 = vector.extract_strided_slice %1 {offsets = [0, 6], sizes = [128, 1], strides = [1, 1]} : vector<128x8xf32> to vector<128x1xf32>
    %38 = vector.extract_strided_slice %11 {offsets = [0, 640], sizes = [128, 128], strides = [1, 1]} : vector<128x896xf32> to vector<128x128xf32>
    %39 = vector.broadcast %37 : vector<128x1xf32> to vector<128x128xf32>
    %40 = arith.mulf %39, %38 : vector<128x128xf32>
    %41 = arith.addf %36, %40 : vector<128x128xf32>
    %42 = vector.extract_strided_slice %1 {offsets = [0, 7], sizes = [128, 1], strides = [1, 1]} : vector<128x8xf32> to vector<128x1xf32>
    %43 = vector.extract_strided_slice %11 {offsets = [0, 768], sizes = [128, 128], strides = [1, 1]} : vector<128x896xf32> to vector<128x128xf32>
    %44 = vector.broadcast %42 : vector<128x1xf32> to vector<128x128xf32>
    %45 = arith.mulf %44, %43 : vector<128x128xf32>
    %46 = arith.addf %41, %45 : vector<128x128xf32>
    %47 = arith.truncf %46 : vector<128x128xf32> to vector<128x128xbf16>
    %c0_8 = arith.constant 0 : index
    %c0_9 = arith.constant 0 : index
    %48 = vector.load %arg5[%c0_8, %c0_9] : memref<128x128xbf16, #tpu.memory_space<vmem>>, vector<128x128xbf16>
    tpu.vector_store %arg5[%c0_8, %c0_9], %47 {strides = array<i32>} : memref<128x128xbf16, #tpu.memory_space<vmem>>, vector<128x128xbf16>,
    return
  }
  func.func @transform_0(%arg0: i32) -> (i32, i32) {
    %c0_i32 = arith.constant 0 : i32
    %c0_i32_0 = arith.constant 0 : i32
    return %arg0, %c0_i32 : i32, i32
  }
  func.func @transform_1(%arg0: i32) -> (i32, i32) {
    %c0_i32 = arith.constant 0 : i32
    %c0_i32_0 = arith.constant 0 : i32
    return %arg0, %c0_i32 : i32, i32
  }
  func.func @transform_2(%arg0: i32) -> (i32, i32) {
    %c0_i32 = arith.constant 0 : i32
    %c0_i32_0 = arith.constant 0 : i32
    %c0_i32_1 = arith.constant 0 : i32
    return %c0_i32, %c0_i32_0 : i32, i32
  }
  func.func @transform_3(%arg0: i32) -> (i32, i32) {
    %c0_i32 = arith.constant 0 : i32
    %c0_i32_0 = arith.constant 0 : i32
    %c0_i32_1 = arith.constant 0 : i32
    return %c0_i32, %c0_i32_0 : i32, i32
  }
  func.func @transform_4(%arg0: i32) -> (i32, i32) {
    %c0_i32 = arith.constant 0 : i32
    %c0_i32_0 = arith.constant 0 : i32
    return %arg0, %c0_i32 : i32, i32
  }
}

</mosaic_0001>

<bundles_post_ra>
// kernel: tpu_custom_call.1
= control target key start
LH: loop header
LB: loop body
LE: loop exit
PB: predicated region body
PF: predicated region fallthrough
CT: control target
= control target key end

     0   :  { %9 = vsyncpa [#allocation3], 0  ;;  %s3403_s0 = inlined_call_operand.vmem [shape: f32[128,128], index: 0, kind: input, shape index: {}]   ;;  %s3404_s1 = inlined_call_operand.vmem [shape: f32[128,8], index: 1, kind: input, shape index: {}]   ;;  %s3405_s2 = inlined_call_operand.hbm [shape: bf16[128,128], index: 2, kind: input, shape index: {}]   ;;  %s3406_s3 = inlined_call_operand.hbm [shape: bf16[128,896], index: 3, kind: input, shape index: {}]   ;;  %s3407_s4 = inlined_call_operand.hbm [shape: bf16[128,128], index: 4, kind: output, shape index: {}]  }
   0x1   :  { %10 = vsyncpa [#allocation6], 0 }
   0x2   :  { %11 = vsyncpa [#allocation4], 0  ;;  %s2350_s15 = smov [#allocation2]  }
   0x3   :  { %s21_s16 = sshll.u32 %s2350_s15, 4  ;;  %s22_s16 = int_to_ptr.vmem [resolvable:$true] %s21_s16 }
   0x4   :  { %s2292_s17 = scalar_lea.vmem %s22_s16, 1024  ;;  %p2297_p1 = scmp.lt.s32.totalorder %s22_s16, %s22_s16 }
   0x5   :  { %p2293_p0 = scmp.ne.s32.totalorder %s22_s16, %s2292_s17  ;;  %p2298_p2 = scmp.lt.s32.totalorder %s2292_s17, %s2292_s17 }
   0x7   :  { %p2299_p3 = por %p2298_p2, %p2297_p1 }
   0x9   :  { %p2300_p4 = pnand %p2299_p3, %p2293_p0 }
   0xb   :  { %2303 = shalt.err (!%p2300_p4)
}
   0xc   :  { %s2351_s18 = smov 64   ;;  %s2352_s19 = smov 4  }
   0xd   :  { %27 = dma.hbm_to_vmem [thread:$0]  %s3405_s2, 1024, %s22_s16, [#allocation3], %s2351_s18, %s2351_s18, %s2352_s19  }
   0xe   :  { %s2353_s22 = smov [#allocation5]  }
   0xf   :  { %s33_s23 = sshll.u32 %s2353_s22, 4  ;;  %s34_s23 = int_to_ptr.vmem [resolvable:$true] %s33_s23 }
  0x10   :  { %s2312_s24 = scalar_lea.vmem %s34_s23, 7168  ;;  %p2317_p6 = scmp.lt.s32.totalorder %s34_s23, %s34_s23 }
  0x11   :  { %p2313_p5 = scmp.ne.s32.totalorder %s34_s23, %s2312_s24  ;;  %p2318_p7 = scmp.lt.s32.totalorder %s2312_s24, %s2312_s24 }
  0x13   :  { %p2319_p8 = por %p2318_p7, %p2317_p6 }
  0x15   :  { %p2320_p9 = pnand %p2319_p8, %p2313_p5 }
  0x17   :  { %2323 = shalt.err (!%p2320_p9)
}
  0x18   :  { %s2354_s25 = smov 448   ;;  %s2355_s26 = smov 28  }
  0x19   :  { %39 = dma.hbm_to_vmem [thread:$0]  %s3406_s3, 7168, %s34_s23, [#allocation6], %s2354_s25, %s2354_s25, %s2355_s26  }
  0x1a   :  { %2344 = dma.done.wait [#allocation3], 1024  }
  0x1b   :  { %2345 = vsyncadd [#allocation3], 4294966272 }
  0x1c   :  { %2346 = dma.done.wait [#allocation6], 7168  }
  0x1d   :  { %2347 = vsyncadd [#allocation6], 4294960128  ;;  %v3408_v0 = vmov 0   ;;  %v2196_v1 = vld [vmem:[#allocation2 + $0x38] sm:$0xff]   ;;  %v2197_v2 = vld [vmem:[#allocation2 + $0x30] sm:$0xff]  }
  0x1e   :  { %2180 = vset.pattern.permute.xlu0 %v3408_v0  ;;  %2181 = vset.pattern.permute.xlu1 %v3408_v0  ;;  %v2198_v3 = vld [vmem:[#allocation2 + $0x28] sm:$0xff]   ;;  %v2199_v4 = vld [vmem:[#allocation2 + $0x20] sm:$0xff]   ;;  %v2200_v8 = vld [vmem:[#allocation2 + $0x18] sm:$0xff]  }
  0x1f   :  { %752 = vmatprep.mubr.bf16.mxu1 %v3408_v0  ;;  %2101 = vmatprep.subr.bf16.mxu0 %v2196_v1  ;;  %v2405_v5 = vld [vmem:[%s3403_s0] sm:$0xff]  ;;  %v2410_v6 = vld [vmem:[%s3403_s0 + $0x8] sm:$0xff]  ;;  %v2423_v10 = vld [vmem:[%s3404_s1 + $0x10] sm:$0xff] }
  0x20   :  { %2102 = vmatpush3.bf16.msra.mxu0 %v2196_v1  ;;  %v79_v7 = vpack.c.bf16 %v2410_v6, %v2405_v5  ;;  %v2417_v9 = vld [vmem:[%s3404_s1] sm:$0xff]  ;;  %v2428_v11 = vld [vmem:[%s3404_s1 + $0x8] sm:$0xff]  ;;  %260 = vperm.xlu1 %2181, %v2423_v10   ;;  %v2201_v12 = vld [vmem:[#allocation2 + $0x10] sm:$0xff]   ;;  %v2357_v1 = vmov 1  }
  0x21   :  { %2103 = vmatprep.subr.bf16.mxu0 %v2197_v2  ;;  %250 = vperm.xlu0 %2180, %v2417_v9   ;;  %v2434_v13 = vld [vmem:[%s3404_s1 + $0x18] sm:$0xff]  ;;  %v2202_v14 = vld [vmem:[#allocation2 + $0x8] sm:$0xff]   ;;  %v2440_v15 = vld [vmem:[%s3404_s1 + $0x20] sm:$0xff] }
  0x22   :  { %2117 = vmatprep.mubr.bf16.mxu0 %v79_v7  ;;  %v2204_v16 = vld [vmem:[#allocation5 + $0x18c] ss:$28 sps:$4 sm:$0xff]   ;;  %v2203_v19 = vld [vmem:[#allocation2] sm:$0xff]   ;;  %v2210_v20 = vld [vmem:[#allocation5 + $0x154] ss:$28 sps:$4 sm:$0xff]  }
  0x23   :  { %v2206_v17 = vld [vmem:[#allocation5 + $0x188] ss:$28 sps:$4 sm:$0xff]   ;;  %720 = vmatprep.subr.bf16.mxu1 %v2204_v16  ;;  %v2212_v21 = vld [vmem:[#allocation5 + $0x150] ss:$28 sps:$4 sm:$0xff]   ;;  %v2458_v23 = vld [vmem:[%s3404_s1 + $0x38] sm:$0xff] }
  0x24   :  { %2104 = vmatpush3.bf16.msra.mxu0 %v2197_v2  ;;  %265 = vperm.xlu1 %2181, %v2434_v13   ;;  %v2446_v18 = vld [vmem:[%s3404_s1 + $0x28] sm:$0xff]  ;;  %v2452_v22 = vld [vmem:[%s3404_s1 + $0x30] sm:$0xff]  ;;  %v2216_v24 = vld [vmem:[#allocation5 + $0x11c] ss:$28 sps:$4 sm:$0xff]  }
  0x25   :  { %2105 = vmatprep.subr.bf16.mxu0 %v2198_v3  ;;  %255 = vperm.xlu0 %2180, %v2428_v11   ;;  %v2463_v25 = vld [vmem:[%s3403_s0 + $0x10] sm:$0xff]  ;;  %v2468_v26 = vld [vmem:[%s3403_s0 + $0x18] sm:$0xff]  ;;  %v2473_v27 = vld [vmem:[%s3403_s0 + $0x20] sm:$0xff] }
  0x26   :  { %721 = vmatpush1.bf16.msra.mxu1 %v2206_v17  ;;  %v2478_v28 = vld [vmem:[%s3403_s0 + $0x28] sm:$0xff]  ;;  %v2484_v29 = vld [vmem:[%s3404_s1 + $0x40] sm:$0xff]  ;;  %v2218_v30 = vld [vmem:[#allocation5 + $0x118] ss:$28 sps:$4 sm:$0xff]   ;;  %v80_v35 = vpack.c.bf16 %v2468_v26, %v2463_v25 }
  0x27   :  { %722 = vmatprep.subr.bf16.mxu1 %v2210_v20  ;;  %v2490_v31 = vld [vmem:[%s3404_s1 + $0x48] sm:$0xff]  ;;  %v2209_v32 = vld [vmem:[#allocation5 + $0x194] ss:$28 sps:$4 sm:$0xff]   ;;  %v2222_v33 = vld [vmem:[#allocation5 + $0xe4] ss:$28 sps:$4 sm:$0xff]   ;;  %v81_v38 = vpack.c.bf16 %v2478_v28, %v2473_v27 }
  0x28   :  { %2106 = vmatpush3.bf16.msra.mxu0 %v2198_v3  ;;  %275 = vperm.xlu1 %2181, %v2446_v18   ;;  %v2495_v34 = vld [vmem:[%s3404_s1 + $0x50] sm:$0xff]  ;;  %v2503_v36 = vld [vmem:[%s3404_s1 + $0x58] sm:$0xff]  ;;  %v2228_v41 = vld [vmem:[#allocation5 + $0xac] ss:$28 sps:$4 sm:$0xff]  }
  0x29   :  { %2107 = vmatprep.subr.bf16.mxu0 %v2199_v4  ;;  %270 = vperm.xlu0 %2180, %v2440_v15   ;;  %v2207_v37 = vld [vmem:[#allocation5 + $0x190] ss:$28 sps:$4 sm:$0xff]   ;;  %v2215_v39 = vld [vmem:[#allocation5 + $0x15c] ss:$28 sps:$4 sm:$0xff]   ;;  %v2521_v44 = vld [vmem:[%s3404_s1 + $0x60] sm:$0xff] }
  0x2a   :  { %723 = vmatpush1.bf16.msra.mxu1 %v2212_v21  ;;  %v2224_v40 = vld [vmem:[#allocation5 + $0xe0] ss:$28 sps:$4 sm:$0xff]   ;;  %v2511_v42 = vld [vmem:[%s3403_s0 + $0x30] sm:$0xff]  ;;  %v2531_v46 = vld [vmem:[%s3403_s0 + $0x48] sm:$0xff] }
  0x2b   :  { %724 = vmatprep.subr.bf16.mxu1 %v2216_v24  ;;  %v2516_v43 = vld [vmem:[%s3403_s0 + $0x38] sm:$0xff]  ;;  %v2526_v45 = vld [vmem:[%s3403_s0 + $0x40] sm:$0xff]  ;;  %v2537_v47 = vld [vmem:[%s3404_s1 + $0x68] sm:$0xff] }
  0x2c   :  { %2108 = vmatpush3.bf16.msra.mxu0 %v2199_v4  ;;  %285 = vperm.xlu1 %2181, %v2458_v23   ;;  %v2213_v48 = vld [vmem:[#allocation5 + $0x158] ss:$28 sps:$4 sm:$0xff]   ;;  %v2230_v49 = vld [vmem:[#allocation5 + $0xa8] ss:$28 sps:$4 sm:$0xff]   ;;  %v82_v52 = vpack.c.bf16 %v2516_v43, %v2511_v42  ;;  %v2219_v54 = vld [vmem:[#allocation5 + $0x120] ss:$28 sps:$4 sm:$0xff]   ;;  %v83_v55 = vpack.c.bf16 %v2531_v46, %v2526_v45 }
  0x2d   :  { %2109 = vmatprep.subr.bf16.mxu0 %v2200_v8  ;;  %280 = vperm.xlu0 %2180, %v2452_v22   ;;  %v2221_v50 = vld [vmem:[#allocation5 + $0x124] ss:$28 sps:$4 sm:$0xff]   ;;  %v2543_v51 = vld [vmem:[%s3404_s1 + $0x70] sm:$0xff]  ;;  %v2551_v53 = vld [vmem:[%s3404_s1 + $0x78] sm:$0xff] }
  0x2e   :  { %725 = vmatpush1.bf16.msra.mxu1 %v2218_v30  ;;  %v2227_v56 = vld [vmem:[#allocation5 + $0xec] ss:$28 sps:$4 sm:$0xff]   ;;  %v2559_v57 = vld [vmem:[%s3403_s0 + $0x50] sm:$0xff]  ;;  %v2564_v58 = vld [vmem:[%s3403_s0 + $0x58] sm:$0xff] }
  0x2f   :  { %726 = vmatprep.subr.bf16.mxu1 %v2222_v33  ;;  %v2569_v59 = vld [vmem:[%s3403_s0 + $0x60] sm:$0xff]  ;;  %v2574_v60 = vld [vmem:[%s3403_s0 + $0x68] sm:$0xff]  ;;  %v2233_v62 = vld [vmem:[#allocation5 + $0xb4] ss:$28 sps:$4 sm:$0xff]   ;;  %v84_v63 = vpack.c.bf16 %v2564_v58, %v2559_v57 }
  0x30   :  { %2110 = vmatpush3.bf16.msra.mxu0 %v2200_v8  ;;  %295 = vperm.xlu1 %2181, %v2490_v31   ;;  %v2225_v61 = vld [vmem:[#allocation5 + $0xe8] ss:$28 sps:$4 sm:$0xff]   ;;  %v85_v2 = vpack.c.bf16 %v2574_v60, %v2569_v59  ;;  %v2231_v3 = vld [vmem:[#allocation5 + $0xb0] ss:$28 sps:$4 sm:$0xff]   ;;  %v2592_v7 = vld [vmem:[%s3403_s0 + $0x78] sm:$0xff] }
  0x31   :  { %2111 = vmatprep.subr.bf16.mxu0 %v2201_v12  ;;  %290 = vperm.xlu0 %2180, %v2484_v29   ;;  %v2587_v4 = vld [vmem:[%s3403_s0 + $0x70] sm:$0xff]  ;;  %v2239_v16 = vld [vmem:[#allocation5 + $0x7c] ss:$28 sps:$4 sm:$0xff]   ;;  %v2245_v21 = vld [vmem:[#allocation5 + $0x44] ss:$28 sps:$4 sm:$0xff]   ;;  %s2364_s0 = smov [#allocation7]  }
  0x32   :  { %727 = vmatpush1.bf16.msra.mxu1 %v2224_v40  ;;  %v86_v8 = vpack.c.bf16 %v2592_v7, %v2587_v4  ;;  %v2236_v17 = vld [vmem:[#allocation5 + $0x70] ss:$28 sps:$4 sm:$0xff]   ;;  %v2240_v20 = vld [vmem:[#allocation5 + $0x3c] ss:$28 sps:$4 sm:$0xff]   ;;  %s1913_s12 = sshll.u32 %s2364_s0, 4  ;;  %s1914_s12 = int_to_ptr.vmem [resolvable:$true] %s1913_s12 }
  0x33   :  { %728 = vmatprep.subr.bf16.mxu1 %v2228_v41  ;;  %v2242_v24 = vld [vmem:[#allocation5 + $0x38] ss:$28 sps:$4 sm:$0xff]   ;;  %v2243_v30 = vld [vmem:[#allocation5 + $0x40] ss:$28 sps:$4 sm:$0xff]   ;;  %v2251_v33 = vld [vmem:[#allocation5 + $0xc] ss:$28 sps:$4 sm:$0xff]   ;;  %p2329_p11 = scmp.lt.s32.totalorder %s1914_s12, %s1914_s12 }
  0x34   :  { %2112 = vmatpush3.bf16.msra.mxu0 %v2201_v12  ;;  %305 = vperm.xlu1 %2181, %v2503_v36   ;;  %v2358_v12 = vmov 2   ;;  %v2641_v40 = vld [vmem:[#allocation5 + $0x1a0] ss:$28 sps:$4 sm:$0xff]   ;;  %v2360_v41 = vmov 4   ;;  %s2324_s13 = scalar_lea.vmem %s1914_s12, 1024 }
  0x35   :  { %2113 = vmatprep.subr.bf16.mxu0 %v2202_v14  ;;  %300 = vperm.xlu0 %2180, %v2495_v34   ;;  %p2325_p10 = scmp.ne.s32.totalorder %s1914_s12, %s2324_s13  ;;  %p2330_p12 = scmp.lt.s32.totalorder %s2324_s13, %s2324_s13 }
  0x36   :  { %729 = vmatpush1.bf16.msra.mxu1 %v2230_v49 }
  0x37   :  { %p2331_p13 = por %p2330_p12, %p2329_p11 }
  0x38   :  { %2114 = vmatpush3.bf16.msra.mxu0 %v2202_v14  ;;  %315 = vperm.xlu1 %2181, %v2537_v47   ;;  %v2234_v14 = vld [vmem:[#allocation5 + $0x74] ss:$28 sps:$4 sm:$0xff]  }
  0x39   :  { %2115 = vmatprep.subr.bf16.mxu0 %v2203_v19  ;;  %310 = vperm.xlu0 %2180, %v2521_v44   ;;  %p2332_p0 = pnand %p2331_p13, %p2325_p10 }
  0x3a   :  { %730 = vmatprep.subr.bf16.mxu1 %v2234_v14  ;;  %v2362_v14 = vmov 6  }
  0x3b   :  { %731 = vmatpush1.bf16.msra.mxu1 %v2236_v17 }
  0x3c   :  { %2116 = vmatpush3.bf16.msra.mxu0 %v2203_v19  ;;  %325 = vperm.xlu1 %2181, %v2551_v53   ;;  %v2237_v19 = vld [vmem:[#allocation5 + $0x78] ss:$28 sps:$4 sm:$0xff]  }
  0x3d   :  { %833 = vmatprep.subr.bf16.mxu0 %v2209_v32  ;;  %320 = vperm.xlu0 %2180, %v2543_v51   ;;  %v2246_v32 = vld [vmem:[#allocation5 + $0x4] ss:$28 sps:$4 sm:$0xff]  }
  0x3e   :  { %732 = vmatprep.subr.bf16.mxu1 %v2240_v20 }
  0x3f   :  { %2118 = vmatmul.mubr.bf16.vlgmr.msra.gmra.mxu0 %v80_v35  ;;  %733 = vmatpush1.bf16.msra.mxu1 %v2242_v24  ;;  %v2248_v35 = vld [vmem:[#allocation5] ss:$28 sps:$4 sm:$0xff]  }
  0x40   :  { %2121 = vmatprep.mubr.bf16.mxu0 %v81_v38  ;;  %834 = vmatpush1.bf16.msra.mxu0 %v2207_v37  ;;  %v2249_v37 = vld [vmem:[#allocation5 + $0x8] ss:$28 sps:$4 sm:$0xff]   ;;  %v2359_v38 = vmov 3  }
  0x41   :  { %835 = vmatprep.subr.bf16.mxu0 %v2215_v39  ;;  %2182 = vset.pattern.permute.xlu0 %v2357_v1  ;;  %v2254_v39 = vld [vmem:[#allocation5 + $0x19c] ss:$28 sps:$4 sm:$0xff]  }
  0x42   :  { %2183 = vset.pattern.permute.xlu1 %v2357_v1  ;;  %1157 = vperm.xlu0 %2182, %v2417_v9  }
  0x43   :  { %1161 = vperm.xlu1 %2183, %v2428_v11   ;;  %734 = vmatprep.subr.bf16.mxu1 %v2246_v32 }
  0x44   :  { %836 = vmatpush1.bf16.msra.mxu0 %v2213_v48  ;;  %735 = vmatpush1.bf16.msra.mxu1 %v2248_v35 }
  0x45   :  { %837 = vmatprep.subr.bf16.mxu0 %v2221_v50  ;;  %946 = vmatprep.subr.bf16.mxu1 %v2254_v39 }
  0x46   :  { %1169 = vperm.xlu0 %2182, %v2434_v13  }
  0x47   :  { %2122 = vmatmul.mubr.bf16.gmra.mxu0 %v82_v52  ;;  %1165 = vperm.xlu1 %2183, %v2423_v10  }
  0x48   :  { %2125 = vmatprep.mubr.bf16.mxu0 %v83_v55  ;;  %838 = vmatpush1.bf16.msra.mxu0 %v2219_v54  ;;  %v2361_v54 = vmov 5  }
  0x49   :  { %839 = vmatprep.subr.bf16.mxu0 %v2227_v56 }
  0x4a   :  { %1177 = vperm.xlu0 %2182, %v2446_v18  }
  0x4b   :  { %1173 = vperm.xlu1 %2183, %v2440_v15  }
  0x4c   :  { %840 = vmatpush1.bf16.msra.mxu0 %v2225_v61 }
  0x4d   :  { %841 = vmatprep.subr.bf16.mxu0 %v2233_v62 }
  0x4e   :  { %1185 = vperm.xlu0 %2182, %v2458_v23  }
  0x4f   :  { %2126 = vmatmul.mubr.bf16.gmra.mxu0 %v84_v63  ;;  %1181 = vperm.xlu1 %2183, %v2452_v22  }
  0x50   :  { %2129 = vmatprep.mubr.bf16.mxu0 %v85_v2  ;;  %842 = vmatpush1.bf16.msra.mxu0 %v2231_v3 }
  0x51   :  { %843 = vmatprep.subr.bf16.mxu0 %v2239_v16 }
  0x52   :  { %1193 = vperm.xlu0 %2182, %v2490_v31  }
  0x53   :  { %1189 = vperm.xlu1 %2183, %v2484_v29  }
  0x54   :  { %844 = vmatpush1.bf16.msra.mxu0 %v2237_v19 }
  0x55   :  { %845 = vmatprep.subr.bf16.mxu0 %v2245_v21 }
  0x56   :  { %1201 = vperm.xlu0 %2182, %v2503_v36  }
  0x57   :  { %2130 = vmatmul.mubr.bf16.gmra.mxu0 %v86_v8  ;;  %1197 = vperm.xlu1 %2183, %v2495_v34  }
  0x58   :  { %865 = vmatprep.mubr.bf16.mxu0 %v3408_v0  ;;  %846 = vmatpush1.bf16.msra.mxu0 %v2243_v30  ;;  %v3410_v0 = vmov 7  }
  0x59   :  { %847 = vmatprep.subr.bf16.mxu0 %v2251_v33 }
  0x5a   :  { %1209 = vperm.xlu0 %2182, %v2537_v47  }
  0x5b   :  { %1205 = vperm.xlu1 %2183, %v2521_v44  }
  0x5c   :  { %848 = vmatpush1.bf16.msra.mxu0 %v2249_v37 }
  0x5d   :  { %2133 = vmatprep.subr.bf16.mxu0 %v2641_v40 }
  0x5e   :  { %1217 = vperm.xlu0 %2182, %v2551_v53  }
  0x5f   :  { %1213 = vperm.xlu1 %2183, %v2543_v51  }
  0x62   :  { %2185 = vset.pattern.permute.xlu0 %v2358_v12 }
  0x63   :  { %2184 = vset.pattern.permute.xlu1 %v2358_v12  ;;  %1257 = vperm.xlu0 %2185, %v2428_v11  }
  0x64   :  { %1253 = vperm.xlu1 %2184, %v2417_v9  }
  0x67   :  { %1269 = vperm.xlu0 %2185, %v2440_v15  }
  0x68   :  { %1261 = vperm.xlu1 %2184, %v2423_v10  }
  0x6b   :  { %1277 = vperm.xlu0 %2185, %v2452_v22  }
  0x6c   :  { %1265 = vperm.xlu1 %2184, %v2434_v13  }
  0x6f   :  { %1285 = vperm.xlu0 %2185, %v2484_v29  }
  0x70   :  { %1273 = vperm.xlu1 %2184, %v2446_v18  }
  0x73   :  { %1293 = vperm.xlu0 %2185, %v2495_v34  }
  0x74   :  { %1281 = vperm.xlu1 %2184, %v2458_v23  }
  0x77   :  { %1301 = vperm.xlu0 %2185, %v2521_v44  }
  0x78   :  { %1289 = vperm.xlu1 %2184, %v2490_v31  }
  0x7b   :  { %1309 = vperm.xlu0 %2185, %v2543_v51  }
  0x7c   :  { %1297 = vperm.xlu1 %2184, %v2503_v36  }
  0x7f   :  { %2186 = vset.pattern.permute.xlu0 %v2359_v38 }
  0x80   :  { %1305 = vperm.xlu1 %2184, %v2537_v47   ;;  %1349 = vperm.xlu0 %2186, %v2417_v9  }
  0x84   :  { %1313 = vperm.xlu1 %2184, %v2551_v53   ;;  %1361 = vperm.xlu0 %2186, %v2434_v13  }
  0x88   :  { %2187 = vset.pattern.permute.xlu1 %v2359_v38  ;;  %1369 = vperm.xlu0 %2186, %v2446_v18  }
  0x89   :  { %1353 = vperm.xlu1 %2187, %v2428_v11  }
  0x8c   :  { %1377 = vperm.xlu0 %2186, %v2458_v23  }
  0x8d   :  { %1357 = vperm.xlu1 %2187, %v2423_v10  }
  0x90   :  { %1385 = vperm.xlu0 %2186, %v2490_v31  }
  0x91   :  { %1365 = vperm.xlu1 %2187, %v2440_v15  }
  0x94   :  { %1393 = vperm.xlu0 %2186, %v2503_v36  }
  0x95   :  { %1373 = vperm.xlu1 %2187, %v2452_v22  }
  0x98   :  { %1401 = vperm.xlu0 %2186, %v2537_v47  }
  0x99   :  { %1381 = vperm.xlu1 %2187, %v2484_v29  }
  0x9b   :  { %v2648_v48 = vpop.permute.xlu1 %260 }
  0x9c   :  { %1409 = vperm.xlu0 %2186, %v2551_v53   ;;  %v251_v61 = vpop.permute.xlu0 %250 }
  0x9d   :  { %1389 = vperm.xlu1 %2187, %v2495_v34  }
  0x9f   :  { %v2654_v49 = vpop.permute.xlu1 %265 }
  0xa0   :  { %2189 = vset.pattern.permute.xlu0 %v2360_v41  ;;  %v256_v63 = vpop.permute.xlu0 %255 }
  0xa1   :  { %1397 = vperm.xlu1 %2187, %v2521_v44   ;;  %1449 = vperm.xlu0 %2189, %v2428_v11  }
  0xa3   :  { %v2658_v50 = vpop.permute.xlu1 %275 }
  0xa4   :  { %v2690_v3 = vpop.permute.xlu0 %270 }
  0xa5   :  { %1405 = vperm.xlu1 %2187, %v2543_v51   ;;  %1461 = vperm.xlu0 %2189, %v2440_v15  }
  0xa7   :  { %v2664_v52 = vpop.permute.xlu1 %285 }
  0xa8   :  { %v2696_v12 = vpop.permute.xlu0 %280 }
  0xa9   :  { %2188 = vset.pattern.permute.xlu1 %v2360_v41  ;;  %1469 = vperm.xlu0 %2189, %v2452_v22  }
  0xaa   :  { %1445 = vperm.xlu1 %2188, %v2417_v9  }
  0xab   :  { %v2668_v55 = vpop.permute.xlu1 %295 }
  0xac   :  { %v2703_v17 = vpop.permute.xlu0 %290 }
  0xad   :  { %1477 = vperm.xlu0 %2189, %v2484_v29  }
  0xae   :  { %1453 = vperm.xlu1 %2188, %v2423_v10  }
  0xaf   :  { %v2673_v56 = vpop.permute.xlu1 %305 }
  0xb0   :  { %v2710_v20 = vpop.permute.xlu0 %300 }
  0xb1   :  { %1485 = vperm.xlu0 %2189, %v2495_v34  }
  0xb2   :  { %1457 = vperm.xlu1 %2188, %v2434_v13  }
  0xb3   :  { %v2678_v62 = vpop.permute.xlu1 %315 }
  0xb4   :  { %v2716_v24 = vpop.permute.xlu0 %310 }
  0xb5   :  { %1493 = vperm.xlu0 %2189, %v2521_v44  }
  0xb6   :  { %1465 = vperm.xlu1 %2188, %v2446_v18  }
  0xb7   :  { %v2682_v1 = vpop.permute.xlu1 %325 }
  0xb8   :  { %v2724_v33 = vpop.permute.xlu0 %320 }
  0xb9   :  { %1501 = vperm.xlu0 %2189, %v2543_v51  }
  0xba   :  { %1473 = vperm.xlu1 %2188, %v2458_v23  }
  0xbd   :  { %2190 = vset.pattern.permute.xlu0 %v2361_v54  ;;  %v2728_v39 = vpop.permute.xlu0 %1157 }
  0xbe   :  { %1481 = vperm.xlu1 %2188, %v2490_v31   ;;  %1541 = vperm.xlu0 %2190, %v2417_v9   ;;  %v2686_v2 = vpop.permute.xlu1 %1161 }
  0xc2   :  { %1489 = vperm.xlu1 %2188, %v2503_v36   ;;  %1553 = vperm.xlu0 %2190, %v2434_v13   ;;  %v2694_v8 = vpop.permute.xlu1 %1165 }
  0xc6   :  { %1497 = vperm.xlu1 %2188, %v2537_v47   ;;  %1561 = vperm.xlu0 %2190, %v2446_v18   ;;  %v2700_v16 = vpop.permute.xlu1 %1173 }
  0xc7   :  { %3421 = vst [vmem:[#allocation11_spill] sm:$0xff] %v2700_v16 }
  0xca   :  { %1505 = vperm.xlu1 %2188, %v2551_v53   ;;  %1569 = vperm.xlu0 %2190, %v2458_v23   ;;  %v2708_v19 = vpop.permute.xlu1 %1181 }
  0xcb   :  { %3422 = vst [vmem:[#allocation12_spill] sm:$0xff] %v2708_v19  ;;  %v2252_v19 = vld [vmem:[#allocation5 + $0x198] ss:$28 sps:$4 sm:$0xff]  }
  0xce   :  { %2191 = vset.pattern.permute.xlu1 %v2361_v54  ;;  %1577 = vperm.xlu0 %2190, %v2490_v31   ;;  %v2714_v21 = vpop.permute.xlu1 %1189 }
  0xcf   :  { %1545 = vperm.xlu1 %2191, %v2428_v11   ;;  %3423 = vst [vmem:[#allocation13_spill] sm:$0xff] %v2714_v21 }
  0xd2   :  { %1585 = vperm.xlu0 %2190, %v2503_v36   ;;  %v2722_v32 = vpop.permute.xlu1 %1197 }
  0xd3   :  { %1549 = vperm.xlu1 %2191, %v2423_v10   ;;  %3424 = vst [vmem:[#allocation14_spill] sm:$0xff] %v2722_v32 }
  0xd6   :  { %1593 = vperm.xlu0 %2190, %v2537_v47   ;;  %v2730_v54 = vpop.permute.xlu1 %1205 }
  0xd7   :  { %1557 = vperm.xlu1 %2191, %v2440_v15   ;;  %3425 = vst [vmem:[#allocation15_spill] sm:$0xff] %v2730_v54 }
  0xda   :  { %1601 = vperm.xlu0 %2190, %v2551_v53   ;;  %v2751_v16 = vpop.permute.xlu1 %1213 }
  0xdb   :  { %1565 = vperm.xlu1 %2191, %v2452_v22   ;;  %3426 = vst [vmem:[#allocation16_spill] sm:$0xff] %v2751_v16 }
  0xde   :  { %2193 = vset.pattern.permute.xlu0 %v2362_v14 }
  0xdf   :  { %1573 = vperm.xlu1 %2191, %v2484_v29   ;;  %1641 = vperm.xlu0 %2193, %v2428_v11  }
  0xe3   :  { %1581 = vperm.xlu1 %2191, %v2495_v34   ;;  %1653 = vperm.xlu0 %2193, %v2440_v15  }
  0xe7   :  { %1589 = vperm.xlu1 %2191, %v2521_v44   ;;  %1661 = vperm.xlu0 %2193, %v2452_v22  }
  0xeb   :  { %1597 = vperm.xlu1 %2191, %v2543_v51   ;;  %1669 = vperm.xlu0 %2193, %v2484_v29  }
  0xef   :  { %2192 = vset.pattern.permute.xlu1 %v2362_v14  ;;  %1677 = vperm.xlu0 %2193, %v2495_v34  }
  0xf0   :  { %1637 = vperm.xlu1 %2192, %v2417_v9  }
  0xf3   :  { %1685 = vperm.xlu0 %2193, %v2521_v44  }
  0xf4   :  { %1645 = vperm.xlu1 %2192, %v2423_v10  }
  0xf7   :  { %1693 = vperm.xlu0 %2193, %v2543_v51  }
  0xf8   :  { %1649 = vperm.xlu1 %2192, %v2434_v13  }
  0xfb   :  { %2194 = vset.pattern.permute.xlu0 %v3410_v0  ;;  %v2748_v0 = vpop.permute.xlu0 %1169 }
  0xfc   :  { %1657 = vperm.xlu1 %2192, %v2446_v18   ;;  %1733 = vperm.xlu0 %2194, %v2417_v9  }
  0xff   :  { %v2119_v30 = vpop.f32.mrf.mxu0 }
 0x100   :  { %1665 = vperm.xlu1 %2192, %v2458_v23   ;;  %1745 = vperm.xlu0 %2194, %v2434_v13  }
 0x101   :  { %v185_v35 = vpop.f32.mrf.mxu0 }
 0x102   :  { %v328_v38 = vmul.f32 %v251_v61, %v185_v35 }
 0x103   :  { %v2120_v37 = vpop.f32.mrf.mxu0 }
 0x104   :  { %v2738_v21 = vadd.f32 %v328_v38, %v2405_v5  ;;  %v331_v54 = vmul.f32 %v2120_v37, %v2654_v49  ;;  %v330_v5 = vmul.f32 %v2119_v30, %v2648_v48  ;;  %v3427_v49 = vmov 0   ;;  %v2255_v37 = vld [vmem:[#allocation5 + $0x160] ss:$28 sps:$4 sm:$0xff]   ;;  %1673 = vperm.xlu1 %2192, %v2490_v31   ;;  %v2767_v48 = vpop.permute.xlu0 %1177  ;;  %1753 = vperm.xlu0 %2194, %v2446_v18  }
 0x105   :  { %v188_v41 = vpop.f32.mrf.mxu0 }
 0x106   :  { %v329_v14 = vmul.f32 %v256_v63, %v188_v41  ;;  %v2257_v41 = vld [vmem:[#allocation5 + $0x164] ss:$28 sps:$4 sm:$0xff]   ;;  %v2759_v38 = vadd.f32 %v331_v54, %v2468_v26  ;;  %v2765_v13 = vadd.f32 %v330_v5, %v2463_v25  ;;  %v2770_v26 = vpop.permute.xlu1 %1253  ;;  %v2272_v54 = vld [vmem:[#allocation5 + $0x130] ss:$28 sps:$4 sm:$0xff]   ;;  %v2273_v5 = vld [vmem:[#allocation5 + $0xf8] ss:$28 sps:$4 sm:$0xff]  }
 0x107   :  { %v2734_v32 = vpop.f32.mrf.mxu0  ;;  %v2263_v25 = vld [vmem:[#allocation5 + $0xf4] ss:$28 sps:$4 sm:$0xff]  }
 0x108   :  { %v2741_v61 = vadd.f32 %v329_v14, %v2410_v6  ;;  %v2268_v6 = vld [vmem:[#allocation5 + $0x168] ss:$28 sps:$4 sm:$0xff]   ;;  %1681 = vperm.xlu1 %2192, %v2503_v36   ;;  %1761 = vperm.xlu0 %2194, %v2458_v23  }
 0x109   :  { %v201_v35 = vpop.f32.mrf.mxu0  ;;  %v2260_v14 = vld [vmem:[#allocation5 + $0x12c] ss:$28 sps:$4 sm:$0xff]  }
 0x10a   :  { %v2746_v63 = vpack.c.bf16 %v2741_v61, %v2738_v21  ;;  %v332_v18 = vmul.f32 %v2690_v3, %v201_v35  ;;  %v2266_v3 = vld [vmem:[#allocation5 + $0xbc] ss:$28 sps:$4 sm:$0xff]   ;;  %v2790_v35 = vpop.permute.xlu1 %1261  ;;  %v2278_v23 = vld [vmem:[#allocation5 + $0x88] ss:$28 sps:$4 sm:$0xff]  }
 0x10b   :  { %v2124_v9 = vpop.f32.mrf.mxu0 }
 0x10c   :  { %753 = vmatmul.mubr.bf16.vlgmr.msra.gmra.mxu1 %v2746_v63  ;;  %866 = vmatmul.mubr.bf16.vlgmr.msra.gmra.mxu0 %v2746_v63 }
 0x10d   :  { %947 = vmatpush1.bf16.msra.mxu1 %v2252_v19  ;;  %762 = vmatprep.mubr.bf16.mxu1 %v3427_v49  ;;  %v204_v16 = vpop.f32.mrf.mxu0  ;;  %v2774_v19 = vpack.c.bf16 %v2759_v38, %v2765_v13 }
 0x10e   :  { %875 = vmatprep.mubr.bf16.mxu0 %v3427_v49  ;;  %948 = vmatprep.subr.bf16.mxu1 %v2257_v41  ;;  %v333_v30 = vmul.f32 %v2658_v50, %v204_v16  ;;  %v2261_v16 = vld [vmem:[#allocation5 + $0xf0] ss:$28 sps:$4 sm:$0xff]  }
 0x10f   :  { %2134 = vmatpush3.bf16.msra.mxu0 %v2641_v40  ;;  %v2258_v40 = vld [vmem:[#allocation5 + $0x128] ss:$28 sps:$4 sm:$0xff]   ;;  %v2777_v41 = vpop.f32.mrf.mxu0  ;;  %1689 = vperm.xlu1 %2192, %v2537_v47  }
 0x110   :  { %2135 = vmatprep.subr.bf16.mxu0 %v2268_v6  ;;  %v2786_v50 = vadd.f32 %v333_v30, %v2478_v28  ;;  %v335_v28 = vmul.f32 %v2124_v9, %v2664_v52  ;;  %v2810_v9 = vpop.permute.xlu1 %1265  ;;  %1769 = vperm.xlu0 %2194, %v2490_v31   ;;  %v2283_v31 = vld [vmem:[#allocation5 + $0x18] ss:$28 sps:$4 sm:$0xff]  }
 0x111   :  { %949 = vmatpush1.bf16.msra.mxu1 %v2255_v37  ;;  %v217_v37 = vpop.f32.mrf.mxu0 }
 0x112   :  { %950 = vmatprep.subr.bf16.mxu1 %v2260_v14  ;;  %v2793_v14 = vadd.f32 %v332_v18, %v2473_v27  ;;  %v334_v27 = vmul.f32 %v2734_v32, %v2696_v12  ;;  %v2813_v18 = vadd.f32 %v335_v28, %v2516_v43  ;;  %v2276_v32 = vld [vmem:[#allocation5 + $0x4c] ss:$28 sps:$4 sm:$0xff]  }
 0x113   :  { %2136 = vmatpush3.bf16.msra.mxu0 %v2268_v6  ;;  %v2788_v6 = vpop.permute.xlu0 %1185  ;;  %1697 = vperm.xlu1 %2192, %v2551_v53   ;;  %v2274_v28 = vld [vmem:[#allocation5 + $0x48] ss:$28 sps:$4 sm:$0xff]  }
 0x114   :  { %763 = vmatmul.mubr.bf16.gmra.mxu1 %v2774_v19  ;;  %876 = vmatmul.mubr.bf16.gmra.mxu0 %v2774_v19  ;;  %3428 = vst [vmem:[#allocation17_spill] sm:$0xff] %v2788_v6  ;;  %v2800_v30 = vpack.c.bf16 %v2786_v50, %v2793_v14  ;;  %v2271_v6 = vld [vmem:[#allocation5 + $0x84] ss:$28 sps:$4 sm:$0xff]   ;;  %3430 = vst [vmem:[#allocation19_spill] sm:$0xff] %v2813_v18 }
 0x115   :  { %772 = vmatprep.mubr.bf16.mxu1 %v3427_v49  ;;  %885 = vmatprep.mubr.bf16.mxu0 %v3427_v49 }
 0x116   :  { %951 = vmatpush1.bf16.msra.mxu1 %v2258_v40  ;;  %2137 = vmatprep.subr.bf16.mxu0 %v2272_v54  ;;  %v2264_v40 = vld [vmem:[#allocation5 + $0xb8] ss:$28 sps:$4 sm:$0xff]  }
 0x117   :  { %952 = vmatprep.subr.bf16.mxu1 %v2263_v25  ;;  %2138 = vmatpush3.bf16.msra.mxu0 %v2272_v54  ;;  %v2277_v25 = vld [vmem:[#allocation5 + $0xc0] ss:$28 sps:$4 sm:$0xff]   ;;  %v2128_v54 = vpop.f32.mrf.mxu0  ;;  %v2806_v52 = vpop.permute.xlu0 %1193 }
 0x118   :  { %2139 = vmatprep.subr.bf16.mxu0 %v2273_v5  ;;  %3429 = vst [vmem:[#allocation18_spill] sm:$0xff] %v2806_v52  ;;  %v336_v52 = vmul.f32 %v2703_v17, %v217_v37  ;;  %1777 = vperm.xlu0 %2194, %v2503_v36  }
 0x119   :  { %v220_v12 = vpop.f32.mrf.mxu0 }
 0x11a   :  { %953 = vmatpush1.bf16.msra.mxu1 %v2261_v16  ;;  %v2816_v16 = vadd.f32 %v334_v27, %v2511_v42  ;;  %v337_v43 = vmul.f32 %v2668_v55, %v220_v12  ;;  %v2281_v42 = vld [vmem:[#allocation5 + $0x14] ss:$28 sps:$4 sm:$0xff]   ;;  %v2827_v27 = vpop.permute.xlu1 %1273  ;;  %v2838_v17 = vadd.f32 %v336_v52, %v2526_v45  ;;  %v3436_v12 = vmov 7  }
 0x11b   :  { %954 = vmatprep.subr.bf16.mxu1 %v2266_v3  ;;  %2140 = vmatpush3.bf16.msra.mxu0 %v2273_v5  ;;  %v2269_v5 = vld [vmem:[#allocation5 + $0x80] ss:$28 sps:$4 sm:$0xff]   ;;  %v338_v52 = vmul.f32 %v2777_v41, %v2710_v20 }
 0x11c   :  { %773 = vmatmul.mubr.bf16.gmra.mxu1 %v2800_v30  ;;  %886 = vmatmul.mubr.bf16.gmra.mxu0 %v2800_v30  ;;  %3431 = vst [vmem:[#allocation20_spill] sm:$0xff] %v2816_v16  ;;  %v2822_v3 = vpack.c.bf16 %v2813_v18, %v2816_v16  ;;  %v2835_v55 = vadd.f32 %v337_v43, %v2531_v46  ;;  %3434 = vst [vmem:[#allocation23_spill] sm:$0xff] %v2838_v17 }
 0x11d   :  { %782 = vmatprep.mubr.bf16.mxu1 %v3427_v49  ;;  %895 = vmatprep.mubr.bf16.mxu0 %v3427_v49  ;;  %v339_v46 = vmul.f32 %v2128_v54, %v2673_v56  ;;  %v2868_v20 = vadd.f32 %v338_v52, %v2559_v57 }
 0x11e   :  { %955 = vmatpush1.bf16.msra.mxu1 %v2264_v40  ;;  %2141 = vmatprep.subr.bf16.mxu0 %v2277_v25  ;;  %v2282_v40 = vld [vmem:[#allocation5 + $0x50] ss:$28 sps:$4 sm:$0xff]   ;;  %3433 = vst [vmem:[#allocation22_spill] sm:$0xff] %v2835_v55  ;;  %v2850_v43 = vpack.c.bf16 %v2835_v55, %v2838_v17 }
 0x11f   :  { %956 = vmatprep.subr.bf16.mxu1 %v2271_v6  ;;  %2142 = vmatpush3.bf16.msra.mxu0 %v2277_v25  ;;  %v2825_v6 = vpop.permute.xlu0 %1201  ;;  %v2131_v25 = vpop.f32.mrf.mxu0  ;;  %3441 = vst [vmem:[#allocation29_spill] sm:$0xff] %v2868_v20 }
 0x120   :  { %2143 = vmatprep.subr.bf16.mxu0 %v2278_v23  ;;  %3432 = vst [vmem:[#allocation21_spill] sm:$0xff] %v2825_v6  ;;  %2195 = vset.pattern.permute.xlu1 %v3436_v12 }
 0x121   :  { %1737 = vperm.xlu1 %2195, %v2428_v11   ;;  %v2859_v11 = vadd.f32 %v339_v46, %v2564_v58  ;;  %1785 = vperm.xlu0 %2194, %v2537_v47  }
 0x122   :  { %957 = vmatpush1.bf16.msra.mxu1 %v2269_v5  ;;  %v2279_v5 = vld [vmem:[#allocation5 + $0x10] ss:$28 sps:$4 sm:$0xff]  }
 0x123   :  { %958 = vmatprep.subr.bf16.mxu1 %v2276_v32  ;;  %2144 = vmatpush3.bf16.msra.mxu0 %v2278_v23  ;;  %v233_v23 = vpop.f32.mrf.mxu0  ;;  %v2840_v37 = vpop.permute.xlu0 %1209  ;;  %3438 = vst [vmem:[#allocation26_spill] sm:$0xff] %v2859_v11  ;;  %v2872_v41 = vpack.c.bf16 %v2859_v11, %v2868_v20 }
 0x124   :  { %783 = vmatmul.mubr.bf16.gmra.mxu1 %v2822_v3  ;;  %896 = vmatmul.mubr.bf16.gmra.mxu0 %v2822_v3  ;;  %3435 = vst [vmem:[#allocation24_spill] sm:$0xff] %v2840_v37  ;;  %v2843_v32 = vpop.permute.xlu1 %1281 }
 0x125   :  { %792 = vmatprep.mubr.bf16.mxu1 %v3427_v49  ;;  %905 = vmatprep.mubr.bf16.mxu0 %v3427_v49  ;;  %3437 = vst [vmem:[#allocation25_spill] sm:$0xff] %v2843_v32  ;;  %v2132_v45 = vpop.f32.mrf.mxu0 }
 0x126   :  { %959 = vmatpush1.bf16.msra.mxu1 %v2274_v28  ;;  %2145 = vmatprep.subr.bf16.mxu0 %v2282_v40 }
 0x127   :  { %960 = vmatprep.subr.bf16.mxu1 %v2281_v42  ;;  %2146 = vmatpush3.bf16.msra.mxu0 %v2282_v40  ;;  %v2861_v36 = vpop.permute.xlu0 %1217  ;;  %v236_v56 = vpop.f32.mrf.mxu0  ;;  %v342_v42 = vmul.f32 %v2131_v25, %v2724_v33 }
 0x128   :  { %2147 = vmatprep.subr.bf16.mxu0 %v2283_v31  ;;  %3439 = vst [vmem:[#allocation27_spill] sm:$0xff] %v2861_v36  ;;  %1741 = vperm.xlu1 %2195, %v2423_v10   ;;  %v2865_v54 = vpop.permute.xlu1 %1289  ;;  %v341_v28 = vmul.f32 %v2678_v62, %v236_v56  ;;  %v340_v10 = vmul.f32 %v2716_v24, %v233_v23 }
 0x129   :  { %3440 = vst [vmem:[#allocation28_spill] sm:$0xff] %v2865_v54  ;;  %1793 = vperm.xlu0 %2194, %v2551_v53   ;;  %v343_v53 = vmul.f32 %v2132_v45, %v2682_v1 }
 0x12a   :  { %961 = vmatpush1.bf16.msra.mxu1 %v2279_v5  ;;  %v2887_v58 = vadd.f32 %v341_v28, %v2574_v60 }
 0x12b   :  { %2148 = vmatpush3.bf16.msra.mxu0 %v2283_v31  ;;  %v2884_v57 = vpop.permute.xlu0 %1257 }
 0x12c   :  { %793 = vmatmul.mubr.bf16.gmra.mxu1 %v2850_v43  ;;  %906 = vmatmul.mubr.bf16.gmra.mxu0 %v2850_v43  ;;  %v2882_v47 = vpop.permute.xlu1 %1297  ;;  %3443 = vst [vmem:[#allocation31_spill] sm:$0xff] %v2887_v58 }
 0x12d   :  { %802 = vmatprep.mubr.bf16.mxu1 %v3427_v49  ;;  %915 = vmatprep.mubr.bf16.mxu0 %v3427_v49  ;;  %3442 = vst [vmem:[#allocation30_spill] sm:$0xff] %v2882_v47 }
 0x12e   :  { %1749 = vperm.xlu1 %2195, %v2440_v15   ;;  %v2891_v15 = vadd.f32 %v340_v10, %v2569_v59  ;;  %v2909_v59 = vadd.f32 %v342_v42, %v2587_v4 }
 0x12f   :  { %v2899_v40 = vpop.permute.xlu0 %1269 }
 0x130   :  { %3444 = vst [vmem:[#allocation32_spill] sm:$0xff] %v2891_v15  ;;  %v366_v62 = vpack.c.bf16 %v2887_v58, %v2891_v15  ;;  %v2897_v24 = vpop.permute.xlu1 %1305  ;;  %3447 = vst [vmem:[#allocation35_spill] sm:$0xff] %v2909_v59 }
 0x131   :  { %3445 = vst [vmem:[#allocation33_spill] sm:$0xff] %v2897_v24 }
 0x132   :  { %1757 = vperm.xlu1 %2195, %v2452_v22   ;;  %v2905_v22 = vadd.f32 %v343_v53, %v2592_v7 }
 0x133   :  { %v2913_v60 = vpop.permute.xlu0 %1277 }
 0x134   :  { %803 = vmatmul.mubr.bf16.gmra.mxu1 %v2872_v41  ;;  %916 = vmatmul.mubr.bf16.gmra.mxu0 %v2872_v41  ;;  %3446 = vst [vmem:[#allocation34_spill] sm:$0xff] %v2905_v22  ;;  %3449 = vst [vmem:[#allocation37_spill] sm:$0xff] %v2913_v60  ;;  %v367_v1 = vpack.c.bf16 %v2905_v22, %v2909_v59 }
 0x135   :  { %812 = vmatprep.mubr.bf16.mxu1 %v3427_v49  ;;  %925 = vmatprep.mubr.bf16.mxu0 %v3427_v49 }
 0x136   :  { %1765 = vperm.xlu1 %2195, %v2484_v29   ;;  %v2911_v29 = vpop.permute.xlu1 %1313 }
 0x137   :  { %3448 = vst [vmem:[#allocation36_spill] sm:$0xff] %v2911_v29  ;;  %v2923_v4 = vpop.permute.xlu0 %1285 }
 0x138   :  { %3450 = vst [vmem:[#allocation38_spill] sm:$0xff] %v2923_v4 }
 0x13a   :  { %1773 = vperm.xlu1 %2195, %v2495_v34   ;;  %v2921_v34 = vpop.permute.xlu1 %1353 }
 0x13b   :  { %v2931_v7 = vpop.permute.xlu0 %1293 }
 0x13c   :  { %813 = vmatmul.mubr.bf16.gmra.mxu1 %v366_v62  ;;  %926 = vmatmul.mubr.bf16.gmra.mxu0 %v366_v62  ;;  %3451 = vst [vmem:[#allocation39_spill] sm:$0xff] %v2931_v7 }
 0x13d   :  { %822 = vmatprep.mubr.bf16.mxu1 %v3427_v49  ;;  %935 = vmatprep.mubr.bf16.mxu0 %v3427_v49 }
 0x13e   :  { %1781 = vperm.xlu1 %2195, %v2521_v44   ;;  %v2929_v44 = vpop.permute.xlu1 %1357 }
 0x13f   :  { %v2935_v25 = vpop.permute.xlu0 %1301 }
 0x140   :  { %3452 = vst [vmem:[#allocation40_spill] sm:$0xff] %v2935_v25 }
 0x142   :  { %1789 = vperm.xlu1 %2195, %v2543_v51   ;;  %v2933_v33 = vpop.permute.xlu1 %1365 }
 0x144   :  { %823 = vmatmul.mubr.bf16.gmra.mxu1 %v367_v1  ;;  %936 = vmatmul.mubr.bf16.gmra.mxu0 %v367_v1 }
 0x145   :  { %2149 = vmatprep.mubr.bf16.mxu0 %v2746_v63  ;;  %978 = vmatprep.mubr.bf16.mxu1 %v3427_v49 }
 0x146   :  { %v2941_v51 = vpop.permute.xlu1 %1373 }
 0x147   :  { %3453 = vst [vmem:[#allocation41_spill] sm:$0xff] %v2941_v51 }
 0x14a   :  { %v2948_v31 = vpop.permute.xlu1 %1381 }
 0x14b   :  { %3455 = vst [vmem:[#allocation43_spill] sm:$0xff] %v2948_v31 }
 0x14c   :  { %979 = vmatmul.mubr.bf16.vlgmr.msra.gmra.mxu1 %v2746_v63  ;;  %2150 = vmatmul.mubr.bf16.vlgmr.msra.gmra.mxu0 %v2774_v19  ;;  %v2943_v63 = vpop.permute.xlu0 %1309 }
 0x14d   :  { %2153 = vmatprep.mubr.bf16.mxu0 %v2800_v30  ;;  %988 = vmatprep.mubr.bf16.mxu1 %v3427_v49  ;;  %3454 = vst [vmem:[#allocation42_spill] sm:$0xff] %v2943_v63 }
 0x14e   :  { %v2954_v5 = vpop.permute.xlu1 %1389 }
 0x14f   :  { %3456 = vst [vmem:[#allocation44_spill] sm:$0xff] %v2954_v5 }
 0x152   :  { %v2958_v12 = vpop.permute.xlu1 %1397 }
 0x153   :  { %3457 = vst [vmem:[#allocation45_spill] sm:$0xff] %v2958_v12 }
 0x154   :  { %989 = vmatmul.mubr.bf16.gmra.mxu1 %v2774_v19  ;;  %2154 = vmatmul.mubr.bf16.gmra.mxu0 %v2822_v3  ;;  %v2950_v19 = vpop.permute.xlu0 %1349 }
 0x155   :  { %2157 = vmatprep.mubr.bf16.mxu0 %v2850_v43  ;;  %998 = vmatprep.mubr.bf16.mxu1 %v3427_v49 }
 0x156   :  { %v2964_v46 = vpop.permute.xlu1 %1405 }
 0x157   :  { %3459 = vst [vmem:[#allocation47_spill] sm:$0xff] %v2964_v46 }
 0x158   :  { %v2956_v23 = vpop.permute.xlu0 %1361 }
 0x15c   :  { %999 = vmatmul.mubr.bf16.gmra.mxu1 %v2800_v30  ;;  %2158 = vmatmul.mubr.bf16.gmra.mxu0 %v2872_v41  ;;  %v2960_v30 = vpop.permute.xlu0 %1369 }
 0x15d   :  { %2161 = vmatprep.mubr.bf16.mxu0 %v366_v62  ;;  %1008 = vmatprep.mubr.bf16.mxu1 %v3427_v49  ;;  %3458 = vst [vmem:[#allocation46_spill] sm:$0xff] %v2960_v30 }
 0x160   :  { %v2966_v45 = vpop.permute.xlu0 %1377 }
 0x161   :  { %3460 = vst [vmem:[#allocation48_spill] sm:$0xff] %v2966_v45 }
 0x164   :  { %1009 = vmatmul.mubr.bf16.gmra.mxu1 %v2822_v3  ;;  %2162 = vmatmul.mubr.bf16.gmra.mxu0 %v367_v1  ;;  %v2970_v3 = vpop.permute.xlu1 %1445  ;;  %v2972_v52 = vpop.permute.xlu0 %1385 }
 0x165   :  { %1018 = vmatprep.mubr.bf16.mxu1 %v3427_v49  ;;  %3461 = vst [vmem:[#allocation49_spill] sm:$0xff] %v2972_v52 }
 0x168   :  { %v2975_v56 = vpop.permute.xlu1 %1453 }
 0x16c   :  { %1019 = vmatmul.mubr.bf16.gmra.mxu1 %v2850_v43  ;;  %v2977_v43 = vpop.permute.xlu0 %1393  ;;  %v2979_v28 = vpop.permute.xlu1 %1457 }
 0x16d   :  { %1028 = vmatprep.mubr.bf16.mxu1 %v3427_v49  ;;  %3462 = vst [vmem:[#allocation50_spill] sm:$0xff] %v2977_v43 }
 0x170   :  { %v2981_v10 = vpop.permute.xlu0 %1401  ;;  %v2983_v53 = vpop.permute.xlu1 %1465 }
 0x171   :  { %3463 = vst [vmem:[#allocation51_spill] sm:$0xff] %v2981_v10  ;;  %3464 = vst [vmem:[#allocation52_spill] sm:$0xff] %v2983_v53 }
 0x174   :  { %1029 = vmatmul.mubr.bf16.gmra.mxu1 %v2872_v41  ;;  %v2985_v41 = vpop.permute.xlu0 %1409  ;;  %v2987_v42 = vpop.permute.xlu1 %1473 }
 0x175   :  { %1038 = vmatprep.mubr.bf16.mxu1 %v3427_v49  ;;  %3465 = vst [vmem:[#allocation53_spill] sm:$0xff] %v2985_v41  ;;  %3466 = vst [vmem:[#allocation54_spill] sm:$0xff] %v2987_v42 }
 0x178   :  { %v2989_v46 = vpop.permute.xlu0 %1449 }
 0x17c   :  { %1039 = vmatmul.mubr.bf16.gmra.mxu1 %v366_v62  ;;  %v2991_v62 = vpop.permute.xlu1 %1481 }
 0x17d   :  { %1048 = vmatprep.mubr.bf16.mxu1 %v3427_v49  ;;  %3467 = vst [vmem:[#allocation55_spill] sm:$0xff] %v2991_v62  ;;  %v2993_v49 = vpop.permute.xlu0 %1461 }
 0x17e   :  { %3468 = vst [vmem:[#allocation56_spill] sm:$0xff] %v2993_v49 }
 0x180   :  { %v2995_v29 = vpop.permute.xlu1 %1489 }
 0x181   :  { %3469 = vst [vmem:[#allocation57_spill] sm:$0xff] %v2995_v29  ;;  %v2997_v22 = vpop.permute.xlu0 %1469 }
 0x182   :  { %3470 = vst [vmem:[#allocation58_spill] sm:$0xff] %v2997_v22 }
 0x184   :  { %1049 = vmatmul.mubr.bf16.gmra.mxu1 %v367_v1  ;;  %v2999_v36 = vpop.permute.xlu1 %1497 }
 0x185   :  { %3471 = vst [vmem:[#allocation59_spill] sm:$0xff] %v2999_v36  ;;  %v3001_v10 = vpop.permute.xlu0 %1477 }
 0x186   :  { %3472 = vst [vmem:[#allocation60_spill] sm:$0xff] %v3001_v10 }
 0x188   :  { %v3003_v1 = vpop.permute.xlu1 %1505 }
 0x189   :  { %3473 = vst [vmem:[#allocation61_spill] sm:$0xff] %v3003_v1  ;;  %v3005_v63 = vpop.permute.xlu0 %1485 }
 0x18a   :  { %3474 = vst [vmem:[#allocation62_spill] sm:$0xff] %v3005_v63 }
 0x18c   :  { %v3007_v41 = vpop.permute.xlu1 %1545 }
 0x18d   :  { %v3009_v59 = vpop.permute.xlu0 %1493 }
 0x18e   :  { %3475 = vst [vmem:[#allocation63_spill] sm:$0xff] %v3009_v59 }
 0x190   :  { %v3011_v24 = vpop.permute.xlu1 %1549 }
 0x191   :  { %v3013_v58 = vpop.permute.xlu0 %1501 }
 0x192   :  { %3476 = vst [vmem:[#allocation64_spill] sm:$0xff] %v3013_v58 }
 0x194   :  { %v3015_v12 = vpop.permute.xlu1 %1557 }
 0x195   :  { %3477 = vst [vmem:[#allocation65_spill] sm:$0xff] %v3015_v12  ;;  %v3017_v29 = vpop.permute.xlu0 %1541 }
 0x198   :  { %v3019_v43 = vpop.permute.xlu1 %1565 }
 0x199   :  { %3478 = vst [vmem:[#allocation66_spill] sm:$0xff] %v3019_v43  ;;  %v3021_v36 = vpop.permute.xlu0 %1553 }
 0x19a   :  { %3479 = vst [vmem:[#allocation67_spill] sm:$0xff] %v3021_v36 }
 0x19c   :  { %v3023_v37 = vpop.permute.xlu1 %1573 }
 0x19d   :  { %3480 = vst [vmem:[#allocation68_spill] sm:$0xff] %v3023_v37  ;;  %v3025_v1 = vpop.permute.xlu0 %1561 }
 0x19e   :  { %3481 = vst [vmem:[#allocation69_spill] sm:$0xff] %v3025_v1 }
 0x1a0   :  { %v3027_v63 = vpop.permute.xlu1 %1581 }
 0x1a1   :  { %3482 = vst [vmem:[#allocation70_spill] sm:$0xff] %v3027_v63  ;;  %v3029_v25 = vpop.permute.xlu0 %1569 }
 0x1a2   :  { %3483 = vst [vmem:[#allocation71_spill] sm:$0xff] %v3029_v25 }
 0x1a4   :  { %v3043_v5 = vpop.permute.xlu1 %1589 }
 0x1a5   :  { %3484 = vst [vmem:[#allocation72_spill] sm:$0xff] %v3043_v5  ;;  %v3045_v37 = vpop.permute.xlu0 %1577 }
 0x1a6   :  { %3485 = vst [vmem:[#allocation73_spill] sm:$0xff] %v3045_v37 }
 0x1a8   :  { %v3059_v20 = vpop.permute.xlu1 %1597 }
 0x1a9   :  { %3486 = vst [vmem:[#allocation74_spill] sm:$0xff] %v3059_v20  ;;  %v3061_v42 = vpop.permute.xlu0 %1585 }
 0x1aa   :  { %3487 = vst [vmem:[#allocation75_spill] sm:$0xff] %v3061_v42 }
 0x1ac   :  { %v3075_v45 = vpop.permute.xlu1 %1637 }
 0x1ad   :  { %v3077_v1 = vpop.permute.xlu0 %1593 }
 0x1ae   :  { %3488 = vst [vmem:[#allocation76_spill] sm:$0xff] %v3077_v1 }
 0x1b0   :  { %v3091_v12 = vpop.permute.xlu1 %1645 }
 0x1b1   :  { %3492 = vst [vmem:[#allocation80_spill] sm:$0xff] %v3091_v12  ;;  %v3093_v32 = vpop.permute.xlu0 %1601 }
 0x1b2   :  { %3493 = vst [vmem:[#allocation81_spill] sm:$0xff] %v3093_v32 }
 0x1cc   :  { %v3031_v59 = vpop.f32.mrf.mxu1  ;;  %v3033_v15 = vpop.f32.mrf.mxu0 }
 0x1ce   :  { %v3035_v58 = vpop.f32.mrf.mxu1  ;;  %v3037_v62 = vpop.f32.mrf.mxu0 }
 0x1d0   :  { %v3039_v47 = vpop.f32.mrf.mxu1  ;;  %v3041_v11 = vpop.f32.mrf.mxu0 }
 0x1d2   :  { %v3047_v52 = vpop.f32.mrf.mxu1  ;;  %v3049_v63 = vpop.f32.mrf.mxu0 }
 0x1d4   :  { %v3051_v25 = vpop.f32.mrf.mxu1  ;;  %v3053_v10 = vpop.f32.mrf.mxu0 }
 0x1d6   :  { %v3055_v6 = vpop.f32.mrf.mxu1  ;;  %v3057_v7 = vpop.f32.mrf.mxu0 }
 0x1d8   :  { %v3063_v43 = vpop.f32.mrf.mxu1  ;;  %v3065_v5 = vpop.f32.mrf.mxu0 }
 0x1da   :  { %v3067_v37 = vpop.f32.mrf.mxu1  ;;  %v3069_v54 = vpop.f32.mrf.mxu0 }
 0x1dc   :  { %v3071_v55 = vpop.f32.mrf.mxu1  ;;  %v3073_v31 = vpop.f32.mrf.mxu0 }
 0x1de   :  { %v3079_v22 = vpop.f32.mrf.mxu1  ;;  %v3081_v20 = vpop.f32.mrf.mxu0 }
 0x1df   :  { %3489 = vst [vmem:[#allocation77_spill] sm:$0xff] %v3081_v20  ;;  %v3109_v20 = vpop.permute.xlu0 %1641 }
 0x1e0   :  { %v3083_v42 = vpop.f32.mrf.mxu1  ;;  %v3085_v4 = vpop.f32.mrf.mxu0 }
 0x1e1   :  { %3490 = vst [vmem:[#allocation78_spill] sm:$0xff] %v3085_v4  ;;  %v3107_v4 = vpop.permute.xlu1 %1649 }
 0x1e2   :  { %v3087_v17 = vpop.f32.mrf.mxu1  ;;  %v3089_v53 = vpop.f32.mrf.mxu0  ;;  %3499 = vst [vmem:[#allocation87_spill] sm:$0xff] %v3107_v4 }
 0x1e3   :  { %3491 = vst [vmem:[#allocation79_spill] sm:$0xff] %v3089_v53 }
 0x1e4   :  { %v3095_v18 = vpop.f32.mrf.mxu1  ;;  %v3097_v51 = vpop.f32.mrf.mxu0 }
 0x1e5   :  { %3494 = vst [vmem:[#allocation82_spill] sm:$0xff] %v3097_v51 }
 0x1e6   :  { %v3099_v1 = vpop.f32.mrf.mxu1  ;;  %v3101_v30 = vpop.f32.mrf.mxu0 }
 0x1e7   :  { %3495 = vst [vmem:[#allocation83_spill] sm:$0xff] %v3099_v1  ;;  %3496 = vst [vmem:[#allocation84_spill] sm:$0xff] %v3101_v30  ;;  %v3123_v30 = vpop.permute.xlu1 %1657 }
 0x1e8   :  { %v3103_v36 = vpop.f32.mrf.mxu1  ;;  %v3105_v49 = vpop.f32.mrf.mxu0  ;;  %3506 = vst [vmem:[#allocation94_spill] sm:$0xff] %v3123_v30 }
 0x1e9   :  { %3497 = vst [vmem:[#allocation85_spill] sm:$0xff] %v3103_v36  ;;  %3498 = vst [vmem:[#allocation86_spill] sm:$0xff] %v3105_v49  ;;  %v3125_v36 = vpop.permute.xlu0 %1653 }
 0x1ea   :  { %v3111_v53 = vpop.f32.mrf.mxu1  ;;  %v3113_v12 = vpop.f32.mrf.mxu0  ;;  %3507 = vst [vmem:[#allocation95_spill] sm:$0xff] %v3125_v36 }
 0x1eb   :  { %3500 = vst [vmem:[#allocation88_spill] sm:$0xff] %v3111_v53  ;;  %3501 = vst [vmem:[#allocation89_spill] sm:$0xff] %v3113_v12 }
 0x1ec   :  { %v3115_v32 = vpop.f32.mrf.mxu1  ;;  %v3117_v60 = vpop.f32.mrf.mxu0 }
 0x1ed   :  { %3502 = vst [vmem:[#allocation90_spill] sm:$0xff] %v3115_v32  ;;  %3503 = vst [vmem:[#allocation91_spill] sm:$0xff] %v3117_v60  ;;  %v3139_v60 = vpop.permute.xlu1 %1665 }
 0x1ee   :  { %v3119_v51 = vpop.f32.mrf.mxu1  ;;  %v3121_v1 = vpop.f32.mrf.mxu0  ;;  %3514 = vst [vmem:[#allocation102_spill] sm:$0xff] %v3139_v60 }
 0x1ef   :  { %3504 = vst [vmem:[#allocation92_spill] sm:$0xff] %v3119_v51  ;;  %3505 = vst [vmem:[#allocation93_spill] sm:$0xff] %v3121_v1  ;;  %v3141_v51 = vpop.permute.xlu0 %1661 }
 0x1f0   :  { %v3127_v49 = vpop.f32.mrf.mxu1  ;;  %v3129_v4 = vpop.f32.mrf.mxu0  ;;  %3515 = vst [vmem:[#allocation103_spill] sm:$0xff] %v3141_v51  ;;  %v1220_v51 = vmul.f32 %v2728_v39, %v3031_v59 }
 0x1f1   :  { %3508 = vst [vmem:[#allocation96_spill] sm:$0xff] %v3127_v49  ;;  %3509 = vst [vmem:[#allocation97_spill] sm:$0xff] %v3129_v4 }
 0x1f2   :  { %v3131_v16 = vpop.f32.mrf.mxu1  ;;  %v3133_v53 = vpop.f32.mrf.mxu0 }
 0x1f3   :  { %3510 = vst [vmem:[#allocation98_spill] sm:$0xff] %v3131_v16  ;;  %3511 = vst [vmem:[#allocation99_spill] sm:$0xff] %v3133_v53  ;;  %v3155_v53 = vpop.permute.xlu1 %1673 }
 0x1f4   :  { %v3135_v12 = vpop.f32.mrf.mxu1  ;;  %v3137_v32 = vpop.f32.mrf.mxu0  ;;  %3521 = vst [vmem:[#allocation109_spill] sm:$0xff] %v3155_v53  ;;  %v1316_v53 = vmul.f32 %v2770_v26, %v3035_v58 }
 0x1f5   :  { %3512 = vst [vmem:[#allocation100_spill] sm:$0xff] %v3135_v12  ;;  %3513 = vst [vmem:[#allocation101_spill] sm:$0xff] %v3137_v32  ;;  %v3157_v12 = vpop.permute.xlu0 %1669 }
 0x1f6   :  { %v3143_v1 = vpop.f32.mrf.mxu1  ;;  %v3145_v30 = vpop.f32.mrf.mxu0  ;;  %3522 = vst [vmem:[#allocation110_spill] sm:$0xff] %v3157_v12  ;;  %v1221_v12 = vmul.f32 %v2686_v2, %v3039_v47  ;;  %v1317_v2 = vmul.f32 %v2884_v57, %v3047_v52 }
 0x1f7   :  { %3516 = vst [vmem:[#allocation104_spill] sm:$0xff] %v3145_v30 }
 0x1f8   :  { %v3147_v36 = vpop.f32.mrf.mxu1  ;;  %v3149_v49 = vpop.f32.mrf.mxu0  ;;  %v1237_v26 = vadd.f32 %v1221_v12, %v2741_v61  ;;  %v1223_v61 = vmul.f32 %v2748_v0, %v3063_v43 }
 0x1f9   :  { %3517 = vst [vmem:[#allocation105_spill] sm:$0xff] %v3147_v36  ;;  %3518 = vst [vmem:[#allocation106_spill] sm:$0xff] %v3149_v49 }
 0x1fa   :  { %v3151_v4 = vpop.f32.mrf.mxu1  ;;  %v3153_v16 = vpop.f32.mrf.mxu0  ;;  %v1239_v43 = vadd.f32 %v1223_v61, %v2759_v38  ;;  %v1320_v38 = vmul.f32 %v2899_v40, %v3079_v22  ;;  %v1225_v61 = vmul.f32 %v2767_v48, %v3083_v42  ;;  %v1415_v22 = vmul.f32 %v2956_v23, %v3065_v5 }
 0x1fb   :  { %3519 = vst [vmem:[#allocation107_spill] sm:$0xff] %v3151_v4  ;;  %3520 = vst [vmem:[#allocation108_spill] sm:$0xff] %v3153_v16  ;;  %v1236_v16 = vadd.f32 %v1220_v51, %v2738_v21  ;;  %v1321_v5 = vmul.f32 %v2827_v27, %v3087_v17 }
 0x1fc   :  { %v3159_v32 = vpop.f32.mrf.mxu1  ;;  %v3161_v60 = vpop.f32.mrf.mxu0 }
 0x1fd   :  { %3523 = vst [vmem:[#allocation111_spill] sm:$0xff] %v3159_v32  ;;  %3524 = vst [vmem:[#allocation112_spill] sm:$0xff] %v3161_v60  ;;  %v3178_v60 = vpop.permute.xlu1 %1681  ;;  %v3180_v32 = vpop.permute.xlu0 %1677  ;;  %v1332_v51 = vadd.f32 %v1316_v53, %v1236_v16  ;;  %v1333_v53 = vadd.f32 %v1317_v2, %v1237_v26 }
 0x1fe   :  { %v3165_v30 = vpop.f32.mrf.mxu1  ;;  %v3167_v36 = vpop.f32.mrf.mxu0  ;;  %3527 = vst [vmem:[#allocation115_spill] sm:$0xff] %v3178_v60 }
 0x1ff   :  { %3525 = vst [vmem:[#allocation113_spill] sm:$0xff] %v3167_v36  ;;  %v1222_v36 = vmul.f32 %v2694_v8, %v3051_v25  ;;  %v1318_v8 = vmul.f32 %v2790_v35, %v3055_v6  ;;  %v1508_v35 = vmul.f32 %v2970_v3, %v3037_v62  ;;  %v1413_v6 = vmul.f32 %v2921_v34, %v3041_v11 }
 0x200   :  { %v3169_v49 = vpop.f32.mrf.mxu1  ;;  %v3171_v4 = vpop.f32.mrf.mxu0  ;;  %v1509_v34 = vmul.f32 %v2989_v46, %v3049_v63  ;;  %v3531_v46 = vld [vmem:[#allocation12_spill] sm:$0xff] }
 0x201   :  { %3526 = vst [vmem:[#allocation114_spill] sm:$0xff] %v3171_v4  ;;  %v1238_v60 = vadd.f32 %v1222_v36, %v2765_v13  ;;  %v3204_v25 = vpop.permute.xlu1 %1689  ;;  %v3206_v16 = vpop.permute.xlu0 %1685  ;;  %v1429_v2 = vadd.f32 %v1413_v6, %v1333_v53 }
 0x202   :  { %v3182_v39 = vpop.f32.mrf.mxu1  ;;  %v3184_v59 = vpop.f32.mrf.mxu0 }
 0x203   :  { %3528 = vst [vmem:[#allocation116_spill] sm:$0xff] %v3184_v59  ;;  %v1412_v59 = vmul.f32 %v2950_v19, %v3033_v15  ;;  %v3529_v15 = vld [vmem:[#allocation11_spill] sm:$0xff]  ;;  %v1334_v0 = vadd.f32 %v1318_v8, %v1238_v60  ;;  %v1525_v53 = vadd.f32 %v1509_v34, %v1429_v2 }
 0x204   :  { %v3188_v4 = vpop.f32.mrf.mxu1  ;;  %v3190_v21 = vpop.f32.mrf.mxu0  ;;  %v1224_v19 = vmul.f32 %v3529_v15, %v3071_v55  ;;  %v1414_v15 = vmul.f32 %v2929_v44, %v3053_v10 }
 0x205   :  { %v1428_v52 = vadd.f32 %v1412_v59, %v1332_v51  ;;  %v1319_v59 = vmul.f32 %v2810_v9, %v3067_v37  ;;  %v3233_v3 = vpop.permute.xlu0 %1693 }
 0x206   :  { %v3195_v47 = vpop.f32.mrf.mxu1  ;;  %v3197_v58 = vpop.f32.mrf.mxu0  ;;  %v1240_v60 = vadd.f32 %v1224_v19, %v2793_v14  ;;  %v1430_v62 = vadd.f32 %v1414_v15, %v1334_v0  ;;  %v1510_v14 = vmul.f32 %v2975_v56, %v3057_v7  ;;  %v1226_v19 = vmul.f32 %v3531_v46, %v3095_v18 }
 0x207   :  { %v1524_v55 = vadd.f32 %v1508_v35, %v1428_v52  ;;  %v1335_v10 = vadd.f32 %v1319_v59, %v1239_v43  ;;  %v1416_v7 = vmul.f32 %v2933_v33, %v3073_v31  ;;  %v1241_v56 = vadd.f32 %v1225_v61, %v2786_v50 }
 0x208   :  { %v3210_v57 = vpop.f32.mrf.mxu1  ;;  %v3212_v12 = vpop.f32.mrf.mxu0  ;;  %v1336_v63 = vadd.f32 %v1320_v38, %v1240_v60  ;;  %v1526_v6 = vadd.f32 %v1510_v14, %v1430_v62  ;;  %v1511_v15 = vmul.f32 %v2979_v28, %v3069_v54  ;;  %v3533_v38 = vld [vmem:[#allocation83_spill] sm:$0xff]  ;;  %v3538_v28 = vld [vmem:[#allocation77_spill] sm:$0xff] }
 0x209   :  { %v1734_v48 = vpop.permute.xlu0 %1733 }
 0x20a   :  { %v3216_v13 = vpop.f32.mrf.mxu1  ;;  %v3218_v36 = vpop.f32.mrf.mxu0 }
 0x20b   :  { %3530 = vst [vmem:[#allocation11_spill] sm:$0xff] %v3218_v36  ;;  %v3231_v36 = vpop.permute.xlu1 %1697 }
 0x20c   :  { %v980_v51 = vpop.f32.mrf.mxu1  ;;  %v3227_v26 = vpop.f32.mrf.mxu0 }
 0x20d   :  { %v1604_v11 = vmul.f32 %v3017_v29, %v980_v51  ;;  %v1431_v51 = vadd.f32 %v1415_v22, %v1335_v10 }
 0x20e   :  { %v982_v9 = vpop.f32.mrf.mxu1  ;;  %v1093_v37 = vpop.f32.mrf.mxu0 }
 0x20f   :  { %v1620_v8 = vadd.f32 %v1604_v11, %v1524_v55  ;;  %v1700_v44 = vmul.f32 %v3075_v45, %v982_v9  ;;  %v1738_v0 = vpop.permute.xlu1 %1737  ;;  %v1796_v18 = vmul.f32 %v1734_v48, %v1093_v37  ;;  %v1432_v11 = vadd.f32 %v1416_v7, %v1336_v63  ;;  %v3534_v9 = vld [vmem:[#allocation37_spill] sm:$0xff]  ;;  %v3535_v37 = vld [vmem:[#allocation80_spill] sm:$0xff]  ;;  %v3540_v63 = vld [vmem:[#allocation67_spill] sm:$0xff] }
 0x210   :  { %v984_v52 = vpop.f32.mrf.mxu1  ;;  %v2152_v29 = vpop.f32.mrf.mxu0  ;;  %v1322_v33 = vmul.f32 %v3534_v9, %v3533_v38  ;;  %v1527_v54 = vadd.f32 %v1511_v15, %v1431_v51  ;;  %v3544_v48 = vld [vmem:[#allocation13_spill] sm:$0xff]  ;;  %v3548_v15 = vld [vmem:[#allocation19_spill] sm:$0xff]  ;;  %v3549_v38 = vld [vmem:[#allocation88_spill] sm:$0xff] }
 0x211   :  { %v1605_v40 = vmul.f32 %v3007_v41, %v984_v52  ;;  %v1716_v42 = vadd.f32 %v1700_v44, %v1620_v8  ;;  %v1337_v8 = vadd.f32 %v1321_v5, %v1241_v56  ;;  %v3536_v44 = vld [vmem:[#allocation85_spill] sm:$0xff]  ;;  %v3539_v52 = vld [vmem:[#allocation56_spill] sm:$0xff]  ;;  %v3545_v5 = vld [vmem:[#allocation87_spill] sm:$0xff] }
 0x212   :  { %v986_v45 = vpop.f32.mrf.mxu1  ;;  %v1096_v35 = vpop.f32.mrf.mxu0  ;;  %v3550_v9 = vld [vmem:[#allocation25_spill] sm:$0xff] }
 0x213   :  { %v1621_v43 = vadd.f32 %v1605_v40, %v1525_v53  ;;  %v1701_v59 = vmul.f32 %v3109_v20, %v986_v45  ;;  %v1797_v55 = vmul.f32 %v1738_v0, %v1096_v35  ;;  %v3532_v20 = vld [vmem:[#allocation20_spill] sm:$0xff]  ;;  %v1812_v34 = vadd.f32 %v1796_v18, %v1716_v42  ;;  %v1742_v14 = vpop.permute.xlu1 %1741  ;;  %v1746_v40 = vpop.permute.xlu0 %1745  ;;  %v3542_v45 = vld [vmem:[#allocation46_spill] sm:$0xff] }
 0x214   :  { %v990_v23 = vpop.f32.mrf.mxu1  ;;  %v1242_v60 = vadd.f32 %v1226_v19, %v3532_v20  ;;  %v3263_v31 = vpop.f32.mrf.mxu0  ;;  %v1512_v53 = vmul.f32 %v3539_v52, %v3538_v28  ;;  %v3541_v19 = vld [vmem:[#allocation78_spill] sm:$0xff] }
 0x215   :  { %v1717_v41 = vadd.f32 %v1701_v59, %v1621_v43  ;;  %v1606_v2 = vmul.f32 %v3011_v24, %v990_v23  ;;  %v3537_v24 = vld [vmem:[#allocation17_spill] sm:$0xff]  ;;  %v1417_v35 = vmul.f32 %v3542_v45, %v3541_v19  ;;  %v3543_v0 = vld [vmem:[#allocation90_spill] sm:$0xff] }
 0x216   :  { %v992_v50 = vpop.f32.mrf.mxu1  ;;  %v1227_v10 = vmul.f32 %v3537_v24, %v3536_v44  ;;  %v1228_v42 = vmul.f32 %v3544_v48, %v3543_v0  ;;  %v1109_v43 = vpop.f32.mrf.mxu0  ;;  %v1528_v7 = vadd.f32 %v1512_v53, %v1432_v11  ;;  %v3551_v11 = vld [vmem:[#allocation65_spill] sm:$0xff]  ;;  %v3556_v28 = vld [vmem:[#allocation38_spill] sm:$0xff] }
 0x217   :  { %v1813_v27 = vadd.f32 %v1797_v55, %v1717_v41  ;;  %v1622_v17 = vadd.f32 %v1606_v2, %v1526_v6  ;;  %v1702_v62 = vmul.f32 %v3535_v37, %v992_v50  ;;  %v1338_v6 = vadd.f32 %v1322_v33, %v1242_v60  ;;  %v3546_v41 = vld [vmem:[#allocation82_spill] sm:$0xff]  ;;  %v3547_v55 = vld [vmem:[#allocation41_spill] sm:$0xff] }
 0x218   :  { %v994_v61 = vpop.f32.mrf.mxu1  ;;  %v1433_v18 = vadd.f32 %v1417_v35, %v1337_v8  ;;  %v1418_v2 = vmul.f32 %v3547_v55, %v3546_v41  ;;  %v1243_v20 = vadd.f32 %v1227_v10, %v3548_v15  ;;  %v1323_v60 = vmul.f32 %v3550_v9, %v3549_v38  ;;  %v3554_v8 = vld [vmem:[#allocation23_spill] sm:$0xff]  ;;  %v3288_v10 = vpop.f32.mrf.mxu0  ;;  %v3559_v19 = vld [vmem:[#allocation18_spill] sm:$0xff]  ;;  %v3564_v41 = vld [vmem:[#allocation48_spill] sm:$0xff] }
 0x219   :  { %v2025_v22 = vpack.c.bf16 %v1813_v27, %v1812_v34  ;;  %v1607_v46 = vmul.f32 %v3540_v63, %v994_v61  ;;  %v1718_v51 = vadd.f32 %v1702_v62, %v1622_v17  ;;  %v1798_v50 = vmul.f32 %v3227_v26, %v1742_v14  ;;  %v3552_v17 = vld [vmem:[#allocation79_spill] sm:$0xff]  ;;  %v3553_v62 = vld [vmem:[#allocation52_spill] sm:$0xff]  ;;  %v3561_v48 = vld [vmem:[#allocation58_spill] sm:$0xff] }
 0x21a   :  { %v996_v59 = vpop.f32.mrf.mxu1  ;;  %v1799_v34 = vmul.f32 %v2152_v29, %v1746_v40  ;;  %v1513_v44 = vmul.f32 %v3553_v62, %v3552_v17  ;;  %v1434_v24 = vadd.f32 %v1418_v2, %v1338_v6  ;;  %v1244_v61 = vadd.f32 %v1228_v42, %v3554_v8  ;;  %v3557_v26 = vld [vmem:[#allocation95_spill] sm:$0xff]  ;;  %v3558_v40 = vld [vmem:[#allocation96_spill] sm:$0xff]  ;;  %v1112_v38 = vpop.f32.mrf.mxu0 }
 0x21b   :  { %2026 = vst [vmem:[#allocation7] sm:$0xff] %v2025_v22   ;;  %v1623_v56 = vadd.f32 %v1607_v46, %v1527_v54  ;;  %v1703_v23 = vmul.f32 %v3545_v5, %v996_v59  ;;  %v3555_v54 = vld [vmem:[#allocation92_spill] sm:$0xff]  ;;  %v1814_v22 = vadd.f32 %v1798_v50, %v1718_v51  ;;  %v1339_v14 = vadd.f32 %v1323_v60, %v1243_v20  ;;  %v1750_v60 = vpop.permute.xlu1 %1749  ;;  %v3569_v17 = vld [vmem:[#allocation43_spill] sm:$0xff] }
 0x21c   :  { %v1000_v33 = vpop.f32.mrf.mxu1  ;;  %v1324_v52 = vmul.f32 %v3556_v28, %v3555_v54  ;;  %v1229_v45 = vmul.f32 %v3559_v19, %v3558_v40  ;;  %v1529_v0 = vadd.f32 %v1513_v44, %v1433_v18  ;;  %v3560_v6 = vld [vmem:[#allocation84_spill] sm:$0xff]  ;;  %v3570_v44 = vld [vmem:[#allocation22_spill] sm:$0xff]  ;;  %v3574_v40 = vld [vmem:[#allocation89_spill] sm:$0xff] }
 0x21d   :  { %v1719_v27 = vadd.f32 %v1703_v23, %v1623_v56  ;;  %v1608_v37 = vmul.f32 %v3551_v11, %v1000_v33  ;;  %v1514_v42 = vmul.f32 %v3561_v48, %v3560_v6  ;;  %v3562_v56 = vld [vmem:[#allocation69_spill] sm:$0xff]  ;;  %v3563_v23 = vld [vmem:[#allocation86_spill] sm:$0xff]  ;;  %v3565_v2 = vld [vmem:[#allocation100_spill] sm:$0xff]  ;;  %v1754_v33 = vpop.permute.xlu0 %1753  ;;  %v3312_v48 = vpop.f32.mrf.mxu0 }
 0x21e   :  { %v1002_v53 = vpop.f32.mrf.mxu1  ;;  %v1419_v55 = vmul.f32 %v3564_v41, %v3563_v23  ;;  %v1340_v51 = vadd.f32 %v1324_v52, %v1244_v61  ;;  %v1245_v8 = vadd.f32 %v1229_v45, %v3570_v44  ;;  %v3571_v61 = vld [vmem:[#allocation98_spill] sm:$0xff]  ;;  %v3572_v54 = vld [vmem:[#allocation28_spill] sm:$0xff]  ;;  %v3579_v41 = vld [vmem:[#allocation105_spill] sm:$0xff] }
 0x21f   :  { %v1815_v63 = vadd.f32 %v1799_v34, %v1719_v27  ;;  %v1624_v46 = vadd.f32 %v1608_v37, %v1528_v7  ;;  %v1704_v29 = vmul.f32 %v3557_v26, %v1002_v53  ;;  %v3566_v7 = vld [vmem:[#allocation14_spill] sm:$0xff]  ;;  %v1530_v9 = vadd.f32 %v1514_v42, %v1434_v24  ;;  %v3568_v37 = vld [vmem:[#allocation91_spill] sm:$0xff] }
 0x220   :  { %v1004_v35 = vpop.f32.mrf.mxu1  ;;  %v1230_v15 = vmul.f32 %v3566_v7, %v3565_v2  ;;  %v3567_v34 = vld [vmem:[#allocation94_spill] sm:$0xff]  ;;  %v1435_v11 = vadd.f32 %v1419_v55, %v1339_v14  ;;  %v1420_v62 = vmul.f32 %v3569_v17, %v3568_v37  ;;  %v1325_v28 = vmul.f32 %v3572_v54, %v3571_v61  ;;  %v3580_v55 = vld [vmem:[#allocation21_spill] sm:$0xff]  ;;  %v3586_v17 = vld [vmem:[#allocation111_spill] sm:$0xff] }
 0x221   :  { %v2030_v59 = vpack.c.bf16 %v1815_v63, %v1814_v22  ;;  %v1609_v5 = vmul.f32 %v3562_v56, %v1004_v35  ;;  %v1720_v18 = vadd.f32 %v1704_v29, %v1624_v46  ;;  %v1800_v53 = vmul.f32 %v1750_v60, %v1109_v43  ;;  %v3573_v63 = vld [vmem:[#allocation66_spill] sm:$0xff]  ;;  %v3576_v35 = vld [vmem:[#allocation29_spill] sm:$0xff]  ;;  %v3578_v43 = vld [vmem:[#allocation103_spill] sm:$0xff]  ;;  %v1758_v60 = vpop.permute.xlu1 %1757 }
 0x222   :  { %v1006_v20 = vpop.f32.mrf.mxu1  ;;  %v1801_v22 = vmul.f32 %v1754_v33, %v1112_v38  ;;  %v3575_v46 = vld [vmem:[#allocation54_spill] sm:$0xff]  ;;  %v1436_v19 = vadd.f32 %v1420_v62, %v1340_v51  ;;  %v1246_v14 = vadd.f32 %v1230_v15, %v3576_v35  ;;  %v1341_v23 = vadd.f32 %v1325_v28, %v1245_v8  ;;  %v3581_v51 = vld [vmem:[#allocation93_spill] sm:$0xff]  ;;  %v1762_v33 = vpop.permute.xlu0 %1761  ;;  %v3587_v62 = vld [vmem:[#allocation15_spill] sm:$0xff] }
 0x223   :  { %2062 = vst [vmem:[#allocation7 + $0x8] sm:$0xff] %v2030_v59   ;;  %v1625_v50 = vadd.f32 %v1609_v5, %v1529_v0  ;;  %v1705_v27 = vmul.f32 %v3567_v34, %v1006_v20  ;;  %v1515_v29 = vmul.f32 %v3575_v46, %v3574_v40  ;;  %v3577_v0 = vld [vmem:[#allocation39_spill] sm:$0xff]  ;;  %v1816_v42 = vadd.f32 %v1800_v53, %v1720_v18  ;;  %v3582_v20 = vld [vmem:[#allocation60_spill] sm:$0xff]  ;;  %v3585_v18 = vld [vmem:[#allocation49_spill] sm:$0xff]  ;;  %v1125_v8 = vpop.f32.mrf.mxu0 }
 0x224   :  { %v1010_v52 = vpop.f32.mrf.mxu1  ;;  %v1326_v6 = vmul.f32 %v3577_v0, %v3143_v1  ;;  %v1231_v2 = vmul.f32 %v3580_v55, %v3579_v41  ;;  %v1516_v15 = vmul.f32 %v3582_v20, %v3581_v51  ;;  %v1232_v44 = vmul.f32 %v3587_v62, %v3586_v17  ;;  %v3591_v40 = vld [vmem:[#allocation26_spill] sm:$0xff]  ;;  %v3597_v41 = vld [vmem:[#allocation32_spill] sm:$0xff]  ;;  %v3603_v62 = vld [vmem:[#allocation73_spill] sm:$0xff] }
 0x225   :  { %v1721_v24 = vadd.f32 %v1705_v27, %v1625_v50  ;;  %v1610_v26 = vmul.f32 %v3573_v63, %v1010_v52  ;;  %v1531_v38 = vadd.f32 %v1515_v29, %v1435_v11  ;;  %v3583_v50 = vld [vmem:[#allocation71_spill] sm:$0xff]  ;;  %v3584_v27 = vld [vmem:[#allocation97_spill] sm:$0xff]  ;;  %v3588_v52 = vld [vmem:[#allocation102_spill] sm:$0xff] }
 0x226   :  { %v1012_v45 = vpop.f32.mrf.mxu1  ;;  %v1421_v37 = vmul.f32 %v3585_v18, %v3584_v27  ;;  %v1532_v54 = vadd.f32 %v1516_v15, %v1436_v19  ;;  %v3590_v63 = vld [vmem:[#allocation44_spill] sm:$0xff]  ;;  %v1247_v46 = vadd.f32 %v1231_v2, %v3591_v40  ;;  %v3592_v29 = vld [vmem:[#allocation107_spill] sm:$0xff]  ;;  %v3593_v35 = vld [vmem:[#allocation30_spill] sm:$0xff]  ;;  %v1248_v55 = vadd.f32 %v1232_v44, %v3597_v41  ;;  %v1766_v40 = vpop.permute.xlu1 %1765 }
 0x227   :  { %v1817_v59 = vadd.f32 %v1801_v22, %v1721_v24  ;;  %v1626_v56 = vadd.f32 %v1610_v26, %v1530_v9  ;;  %v1706_v5 = vmul.f32 %v3578_v43, %v1012_v45  ;;  %v1342_v9 = vadd.f32 %v1326_v6, %v1246_v14  ;;  %v3589_v24 = vld [vmem:[#allocation101_spill] sm:$0xff]  ;;  %v3596_v43 = vld [vmem:[#allocation55_spill] sm:$0xff]  ;;  %v3602_v27 = vld [vmem:[#allocation24_spill] sm:$0xff] }
 0x228   :  { %v1014_v7 = vpop.f32.mrf.mxu1  ;;  %v1437_v22 = vadd.f32 %v1421_v37, %v1341_v23  ;;  %v1422_v26 = vmul.f32 %v3590_v63, %v3589_v24  ;;  %v1327_v14 = vmul.f32 %v3593_v35, %v3592_v29  ;;  %v1802_v6 = vmul.f32 %v3263_v31, %v1758_v60  ;;  %v3599_v60 = vld [vmem:[#allocation110_spill] sm:$0xff]  ;;  %v3606_v24 = vld [vmem:[#allocation112_spill] sm:$0xff]  ;;  %v3607_v63 = vld [vmem:[#allocation45_spill] sm:$0xff] }
 0x229   :  { %v2035_v1 = vpack.c.bf16 %v1817_v59, %v1816_v42  ;;  %v1611_v34 = vmul.f32 %v3583_v50, %v1014_v7  ;;  %v1722_v11 = vadd.f32 %v1706_v5, %v1626_v56  ;;  %v1803_v45 = vmul.f32 %v3288_v10, %v1762_v33  ;;  %v3594_v42 = vld [vmem:[#allocation68_spill] sm:$0xff]  ;;  %v3595_v56 = vld [vmem:[#allocation99_spill] sm:$0xff]  ;;  %v3608_v35 = vld [vmem:[#allocation109_spill] sm:$0xff] }
 0x22a   :  { %v1016_v61 = vpop.f32.mrf.mxu1  ;;  %v1517_v5 = vmul.f32 %v3596_v43, %v3595_v56  ;;  %v1438_v23 = vadd.f32 %v1422_v26, %v1342_v9  ;;  %v3598_v7 = vld [vmem:[#allocation40_spill] sm:$0xff]  ;;  %v1233_v18 = vmul.f32 %v3602_v27, %v3169_v49  ;;  %v1424_v26 = vmul.f32 %v3607_v63, %v3606_v24  ;;  %v3612_v41 = vld [vmem:[#allocation70_spill] sm:$0xff]  ;;  %v3617_v27 = vld [vmem:[#allocation27_spill] sm:$0xff] }
 0x22b   :  { %2063 = vst [vmem:[#allocation7 + $0x10] sm:$0xff] %v2035_v1   ;;  %v1627_v28 = vadd.f32 %v1611_v34, %v1531_v38  ;;  %v1707_v53 = vmul.f32 %v3588_v52, %v1016_v61  ;;  %v1328_v2 = vmul.f32 %v3598_v7, %v3165_v30  ;;  %v3338_v38 = vpop.f32.mrf.mxu0  ;;  %v1818_v20 = vadd.f32 %v1802_v6, %v1722_v11  ;;  %v3600_v33 = vld [vmem:[#allocation104_spill] sm:$0xff]  ;;  %v3601_v1 = vld [vmem:[#allocation62_spill] sm:$0xff] }
 0x22c   :  { %v1020_v0 = vpop.f32.mrf.mxu1  ;;  %v1518_v50 = vmul.f32 %v3601_v1, %v3600_v33  ;;  %v1343_v34 = vadd.f32 %v1327_v14, %v1247_v46  ;;  %v1533_v9 = vadd.f32 %v1517_v5, %v1437_v22  ;;  %v3604_v61 = vld [vmem:[#allocation106_spill] sm:$0xff]  ;;  %v1770_v46 = vpop.permute.xlu0 %1769  ;;  %v1804_v43 = vmul.f32 %v1766_v40, %v1125_v8  ;;  %v3613_v7 = vld [vmem:[#allocation108_spill] sm:$0xff] }
 0x22d   :  { %v1723_v19 = vadd.f32 %v1707_v53, %v1627_v28  ;;  %v1612_v59 = vmul.f32 %v3594_v42, %v1020_v0  ;;  %v3605_v28 = vld [vmem:[#allocation50_spill] sm:$0xff]  ;;  %v1344_v52 = vadd.f32 %v1328_v2, %v1248_v55  ;;  %v3609_v0 = vld [vmem:[#allocation31_spill] sm:$0xff]  ;;  %v3611_v42 = vld [vmem:[#allocation16_spill] sm:$0xff] }
 0x22e   :  { %v1022_v51 = vpop.f32.mrf.mxu1  ;;  %v1534_v44 = vadd.f32 %v1518_v50, %v1438_v23  ;;  %v1423_v11 = vmul.f32 %v3605_v28, %v3604_v61  ;;  %v1249_v6 = vadd.f32 %v1233_v18, %v3609_v0  ;;  %v3614_v2 = vld [vmem:[#allocation57_spill] sm:$0xff]  ;;  %v3616_v8 = vld [vmem:[#allocation42_spill] sm:$0xff]  ;;  %v1235_v18 = vmul.f32 %v3617_v27, %v3210_v57  ;;  %v1774_v61 = vpop.permute.xlu1 %1773  ;;  %v3623_v57 = vld [vmem:[#allocation115_spill] sm:$0xff] }
 0x22f   :  { %v1819_v15 = vadd.f32 %v1803_v45, %v1723_v19  ;;  %v1628_v31 = vadd.f32 %v1612_v59, %v1532_v54  ;;  %v1708_v10 = vmul.f32 %v3599_v60, %v1022_v51  ;;  %v1128_v54 = vpop.f32.mrf.mxu0  ;;  %v3610_v45 = vld [vmem:[#allocation33_spill] sm:$0xff]  ;;  %v1234_v59 = vmul.f32 %v3611_v42, %v3188_v4  ;;  %v3615_v4 = vld [vmem:[#allocation35_spill] sm:$0xff] }
 0x230   :  { %v1024_v37 = vpop.f32.mrf.mxu1  ;;  %v1439_v14 = vadd.f32 %v1423_v11, %v1343_v34  ;;  %v1329_v19 = vmul.f32 %v3610_v45, %v3182_v39  ;;  %v1805_v5 = vmul.f32 %v1770_v46, %v1128_v54  ;;  %v1519_v51 = vmul.f32 %v3614_v2, %v3613_v7  ;;  %v1778_v28 = vpop.permute.xlu0 %1777  ;;  %v3622_v54 = vld [vmem:[#allocation51_spill] sm:$0xff] }
 0x231   :  { %v2040_v17 = vpack.c.bf16 %v1819_v15, %v1818_v20  ;;  %v1613_v30 = vmul.f32 %v3603_v62, %v1024_v37  ;;  %v1724_v29 = vadd.f32 %v1708_v10, %v1628_v31  ;;  %v1440_v20 = vadd.f32 %v1424_v26, %v1344_v52  ;;  %v3359_v15 = vpop.f32.mrf.mxu0  ;;  %v3619_v62 = vld [vmem:[#allocation63_spill] sm:$0xff] }
 0x232   :  { %v1026_v53 = vpop.f32.mrf.mxu1  ;;  %v1345_v1 = vadd.f32 %v1329_v19, %v1249_v6  ;;  %v1250_v50 = vadd.f32 %v1234_v59, %v3615_v4  ;;  %v1330_v34 = vmul.f32 %v3616_v8, %v3195_v47  ;;  %v1806_v45 = vmul.f32 %v3312_v48, %v1774_v61  ;;  %v3626_v59 = vld [vmem:[#allocation72_spill] sm:$0xff]  ;;  %v3632_v8 = vld [vmem:[#allocation53_spill] sm:$0xff] }
 0x233   :  { %2064 = vst [vmem:[#allocation7 + $0x18] sm:$0xff] %v2040_v17   ;;  %v1629_v49 = vadd.f32 %v1613_v30, %v1533_v9  ;;  %v1709_v22 = vmul.f32 %v3608_v35, %v1026_v53  ;;  %v1820_v60 = vadd.f32 %v1804_v43, %v1724_v29  ;;  %v1535_v9 = vadd.f32 %v1519_v51, %v1439_v14  ;;  %v3618_v17 = vld [vmem:[#allocation113_spill] sm:$0xff]  ;;  %v1141_v24 = vpop.f32.mrf.mxu0  ;;  %v3624_v35 = vld [vmem:[#allocation34_spill] sm:$0xff]  ;;  %v3625_v14 = vld [vmem:[#allocation36_spill] sm:$0xff] }
 0x234   :  { %v1030_v56 = vpop.f32.mrf.mxu1  ;;  %v1520_v30 = vmul.f32 %v3619_v62, %v3618_v17  ;;  %v1331_v0 = vmul.f32 %v3625_v14, %v3216_v13  ;;  %v1807_v19 = vmul.f32 %v3338_v38, %v1778_v28  ;;  %v3627_v43 = vld [vmem:[#allocation116_spill] sm:$0xff] }
 0x235   :  { %v1725_v23 = vadd.f32 %v1709_v22, %v1629_v49  ;;  %v1614_v55 = vmul.f32 %v3612_v41, %v1030_v56  ;;  %v1346_v49 = vadd.f32 %v1330_v34, %v1250_v50  ;;  %v1251_v22 = vadd.f32 %v1235_v18, %v3624_v35  ;;  %v3629_v41 = vld [vmem:[#allocation47_spill] sm:$0xff]  ;;  %v2164_v7 = vpop.f32.mrf.mxu0  ;;  %v3631_v4 = vld [vmem:[#allocation64_spill] sm:$0xff]  ;;  %v1786_v18 = vpop.permute.xlu0 %1785 }
 0x236   :  { %v1032_v31 = vpop.f32.mrf.mxu1  ;;  %v1536_v26 = vadd.f32 %v1520_v30, %v1440_v20  ;;  %v1522_v50 = vmul.f32 %v3631_v4, %v3197_v58  ;;  %v1782_v30 = vpop.permute.xlu1 %1781 }
 0x237   :  { %v1821_v10 = vadd.f32 %v1805_v5, %v1725_v23  ;;  %v1630_v33 = vadd.f32 %v1614_v55, %v1534_v44  ;;  %v1710_v39 = vmul.f32 %v3180_v32, %v1032_v31  ;;  %v3620_v44 = vld [vmem:[#allocation75_spill] sm:$0xff]  ;;  %v3621_v32 = vld [vmem:[#allocation114_spill] sm:$0xff]  ;;  %v1426_v55 = vmul.f32 %v3629_v41, %v3190_v21  ;;  %v1144_v34 = vpop.f32.mrf.mxu0 }
 0x238   :  { %v1034_v37 = vpop.f32.mrf.mxu1  ;;  %v1425_v53 = vmul.f32 %v3622_v54, %v3621_v32  ;;  %v3628_v5 = vld [vmem:[#allocation59_spill] sm:$0xff]  ;;  %v1347_v48 = vadd.f32 %v1331_v0, %v1251_v22  ;;  %v1427_v21 = vmul.f32 %v3632_v8, %v3212_v12  ;;  %v1808_v28 = vmul.f32 %v1782_v30, %v1141_v24  ;;  %v3635_v54 = vld [vmem:[#allocation61_spill] sm:$0xff] }
 0x239   :  { %v2045_v11 = vpack.c.bf16 %v1821_v10, %v1820_v60  ;;  %v1615_v52 = vmul.f32 %v3620_v44, %v1034_v37  ;;  %v1726_v47 = vadd.f32 %v1710_v39, %v1630_v33  ;;  %v1521_v23 = vmul.f32 %v3628_v5, %v3627_v43  ;;  %v3630_v39 = vld [vmem:[#allocation76_spill] sm:$0xff]  ;;  %v3634_v32 = vld [vmem:[#allocation11_spill] sm:$0xff] }
 0x23a   :  { %v1036_v63 = vpop.f32.mrf.mxu1  ;;  %v1441_v29 = vadd.f32 %v1425_v53, %v1345_v1  ;;  %v1442_v60 = vadd.f32 %v1426_v55, %v1346_v49  ;;  %v1443_v62 = vadd.f32 %v1427_v21, %v1347_v48  ;;  %v1523_v12 = vmul.f32 %v3635_v54, %v3634_v32  ;;  %v3636_v49 = vld [vmem:[#allocation81_spill] sm:$0xff]  ;;  %v1790_v24 = vpop.permute.xlu1 %1789 }
 0x23b   :  { %2065 = vst [vmem:[#allocation7 + $0x20] sm:$0xff] %v2045_v11   ;;  %v1631_v40 = vadd.f32 %v1615_v52, %v1535_v9  ;;  %v1711_v46 = vmul.f32 %v3623_v57, %v1036_v63  ;;  %v1822_v51 = vadd.f32 %v1806_v45, %v1726_v47  ;;  %v1809_v11 = vmul.f32 %v1786_v18, %v1144_v34  ;;  %v3633_v52 = vld [vmem:[#allocation74_spill] sm:$0xff] }
 0x23c   :  { %v1040_v6 = vpop.f32.mrf.mxu1  ;;  %v1537_v38 = vadd.f32 %v1521_v23, %v1441_v29  ;;  %v1538_v17 = vadd.f32 %v1522_v50, %v1442_v60  ;;  %v1810_v45 = vmul.f32 %v3359_v15, %v1790_v24 }
 0x23d   :  { %v1727_v42 = vadd.f32 %v1711_v46, %v1631_v40  ;;  %v1616_v56 = vmul.f32 %v3626_v59, %v1040_v6  ;;  %v1794_v46 = vpop.permute.xlu0 %1793 }
 0x23e   :  { %v1042_v2 = vpop.f32.mrf.mxu1 }
 0x23f   :  { %v1823_v20 = vadd.f32 %v1807_v19, %v1727_v42  ;;  %v1632_v31 = vadd.f32 %v1616_v56, %v1536_v26  ;;  %v1712_v13 = vmul.f32 %v3206_v16, %v1042_v2  ;;  %v1811_v19 = vmul.f32 %v2164_v7, %v1794_v46 }
 0x240   :  { %v1044_v10 = vpop.f32.mrf.mxu1 }
 0x241   :  { %v2050_v33 = vpack.c.bf16 %v1823_v20, %v1822_v51  ;;  %v1617_v1 = vmul.f32 %v3630_v39, %v1044_v10  ;;  %v1728_v37 = vadd.f32 %v1712_v13, %v1632_v31 }
 0x242   :  { %v1046_v27 = vpop.f32.mrf.mxu1 }
 0x243   :  { %2066 = vst [vmem:[#allocation7 + $0x28] sm:$0xff] %v2050_v33   ;;  %v1633_v9 = vadd.f32 %v1617_v1, %v1537_v38  ;;  %v1713_v16 = vmul.f32 %v3204_v25, %v1046_v27  ;;  %v1824_v63 = vadd.f32 %v1808_v28, %v1728_v37  ;;  %v1539_v25 = vadd.f32 %v1523_v12, %v1443_v62 }
 0x244   :  { %v1050_v61 = vpop.f32.mrf.mxu1 }
 0x245   :  { %v1729_v44 = vadd.f32 %v1713_v16, %v1633_v9  ;;  %v1618_v58 = vmul.f32 %v3633_v52, %v1050_v61 }
 0x246   :  { %v1052_v53 = vpop.f32.mrf.mxu1 }
 0x247   :  { %v1825_v26 = vadd.f32 %v1809_v11, %v1729_v44  ;;  %v1634_v47 = vadd.f32 %v1618_v58, %v1538_v17  ;;  %v1714_v40 = vmul.f32 %v3233_v3, %v1052_v53 }
 0x248   :  { %v1054_v57 = vpop.f32.mrf.mxu1 }
 0x249   :  { %v2055_v29 = vpack.c.bf16 %v1825_v26, %v1824_v63  ;;  %v1619_v35 = vmul.f32 %v3636_v49, %v1054_v57  ;;  %v1730_v14 = vadd.f32 %v1714_v40, %v1634_v47 }
 0x24a   :  { %v1056_v22 = vpop.f32.mrf.mxu1 }
 0x24b   :  { %2067 = vst [vmem:[#allocation7 + $0x30] sm:$0xff] %v2055_v29   ;;  %v1635_v0 = vadd.f32 %v1619_v35, %v1539_v25  ;;  %v1715_v6 = vmul.f32 %v3231_v36, %v1056_v22  ;;  %v1826_v3 = vadd.f32 %v1810_v45, %v1730_v14 }
 0x24d   :  { %v1731_v42 = vadd.f32 %v1715_v6, %v1635_v0 }
 0x24f   :  { %v1827_v59 = vadd.f32 %v1811_v19, %v1731_v42 }
 0x251   :  { %v2060_v56 = vpack.c.bf16 %v1827_v59, %v1826_v3 }
 0x253   :  { %2068 = vst [vmem:[#allocation7 + $0x38] sm:$0xff] %v2060_v56  }
 0x254   :  { %2335 = shalt.err (!%p2332_p0)
}
 0x255   :  { %1919 = dma.vmem_to_hbm [thread:$0]  %s1914_s12, 1024, %s3407_s4, [#allocation4], %s2351_s18, %s2351_s18, %s2352_s19  }
 0x256   :  { %2348 = dma.done.wait [#allocation4], 1024  }
 0x257   :  { %2349 = vsyncadd [#allocation4], 4294966272 }
 0x258   :  { %1923 = vsyncpa [#allocation3], 1 }
 0x259   :  { %1924 = vsyncpa [#allocation6], 1 }
 0x25a   :  { %1925 = vsyncpa [#allocation4], 1 }

</bundles_post_ra>
